<compile_context>
chip_gen: v7x
topology: tpu7x:2x2x1
jax: 0.10.0
libtpu: 0.0.40
codegen_flags: <defaults>
</compile_context>

<pallas_src>
import math
import jax
import jax.numpy as jnp
from jax.experimental import pallas as pl
from jax.experimental.pallas import tpu as pltpu

# ---------------- small-shape configuration (scaled down from 768/512/8/4) ----
EMBED = 32          # embed_size
N_HEADS = 4         # n_heads
HEAD_DIM = EMBED // N_HEADS
HIDDEN = 64         # dim_feedforward
N_OUTPUTS = 7
NUM_LAYERS = 2
KEY_EMBED = 16      # key_embed_size
VAL_EMBED = 16      # val_embed_size (KEY_EMBED + VAL_EMBED == EMBED)
LN_EPS = 1e-5
NEG_INF = -1e9
VEC_ROWS = 4        # rows of the per-layer packed bias/LN slab
VEC_COLS = 3 * EMBED
OUT_PAD = 128       # lane-dense padded decoder output width


# ---------------------------- fused Pallas kernel -------------------------------
def fused_forward_kernel(x_ref, amask_ref, wqkv_ref, wo_ref, w1_ref, w2_ref,
                         vec_ref, wdec_ref, bdec_ref, o_ref):
    """One batch element per grid step: NUM_LAYERS post-LN encoder layers
    (ReLU FFN, eval mode) + decoder Linear on the CLS row."""
    h = x_ref[0]                                   # (L, E)
    L = h.shape[0]
    amask = amask_ref[0]                           # (L, L) additive key-pad mask
    amask_heads = jnp.tile(amask, (N_HEADS, 1))    # (H*L, L), hoisted out of loops

    for li in range(NUM_LAYERS):
        wqkv = wqkv_ref[li]                        # (E, 3E), scale folded into q cols
        wo = wo_ref[li]                            # (E, E)
        w1 = w1_ref[li]                            # (E, HIDDEN)
        w2 = w2_ref[li]                            # (HIDDEN, E)
        vec = vec_ref[li]                          # (VEC_ROWS, 3E) packed vectors
        bqkv = vec[0:1, :]                         # (1, 3E)
        bo = vec[1:2, 0:EMBED]
        g1 = vec[1:2, EMBED:2 * EMBED]
        beta1 = vec[1:2, 2 * EMBED:3 * EMBED]
        b2 = vec[2:3, 0:EMBED]
        g2 = vec[2:3, EMBED:2 * EMBED]
        beta2 = vec[2:3, 2 * EMBED:3 * EMBED]
        b1 = vec[3:4, 0:HIDDEN]

        # --- QKV projection ------------------------------------------------------
        qkv = jnp.dot(h, wqkv, preferred_element_type=jnp.float32) + bqkv  # (L, 3E)

        # --- per-head scores, softmax batched across heads (sublane stack) -------
        scores = []
        for hh in range(N_HEADS):
            lo = hh * HEAD_DIM
            q_h = qkv[:, lo:lo + HEAD_DIM]
            k_h = qkv[:, EMBED + lo:EMBED + lo + HEAD_DIM]
            scores.append(jnp.einsum('qd,kd->qk', q_h, k_h,
                                     preferred_element_type=jnp.float32))
        s_all = jnp.concatenate(scores, axis=0) + amask_heads           # (H*L, L)
        s_all = s_all - jnp.max(s_all, axis=-1, keepdims=True)
        p_all = jnp.exp(s_all)
        p_all = p_all * pl.reciprocal(jnp.sum(p_all, axis=-1, keepdims=True),
                                      approx=True)

        # --- per-head PV + accumulate through sublane-aligned wo row slices ------
        attn = jnp.zeros((L, EMBED), jnp.float32)
        for hh in range(N_HEADS):
            lo = hh * HEAD_DIM
            v_h = qkv[:, 2 * EMBED + lo:2 * EMBED + lo + HEAD_DIM]
            p_h = p_all[hh * L:(hh + 1) * L, :]
            head = jnp.dot(p_h, v_h, preferred_element_type=jnp.float32)  # (L, Hd)
            attn = attn + jnp.dot(head, wo[lo:lo + HEAD_DIM, :],
                                  preferred_element_type=jnp.float32)
        attn = attn + bo

        # --- residual + LayerNorm 1 (post-norm) ----------------------------------
        h1 = h + attn
        mu = jnp.mean(h1, axis=-1, keepdims=True)
        var = jnp.mean((h1 - mu) ** 2, axis=-1, keepdims=True)
        h1 = (h1 - mu) * jax.lax.rsqrt(var + LN_EPS) * g1 + beta1

        # --- feed forward (ReLU) ---------------------------------------------------
        ff = jnp.maximum(jnp.dot(h1, w1, preferred_element_type=jnp.float32) + b1,
                         0.0)
        ff = jnp.dot(ff, w2, preferred_element_type=jnp.float32) + b2

        # --- residual + LayerNorm 2 -------------------------------------------------
        h2 = h1 + ff
        mu2 = jnp.mean(h2, axis=-1, keepdims=True)
        var2 = jnp.mean((h2 - mu2) ** 2, axis=-1, keepdims=True)
        h = (h2 - mu2) * jax.lax.rsqrt(var2 + LN_EPS) * g2 + beta2

    # --- decoder Linear on the CLS row only, lane-dense padded output -----------
    cls = h[0:1, :]                                                     # (1, E)
    o_ref[0] = (jnp.dot(cls, wdec_ref[...],
                        preferred_element_type=jnp.float32) + bdec_ref[...])


# ---------------------------- host-side parameter packing --------------------------
def pack_params(layers):
    scale = 1.0 / math.sqrt(HEAD_DIM)
    wqkv_l, wo_l, w1_l, w2_l, vec_l = [], [], [], [], []
    for p in layers:
        wqkv = p['wqkv'].at[:, :EMBED].multiply(scale)   # fold attn scale into q
        bqkv = p['bqkv'].at[:, :EMBED].multiply(scale)
        wqkv_l.append(wqkv)
        wo_l.append(p['wo'])
        w1_l.append(p['w1'])
        w2_l.append(p['w2'])
        vec = jnp.zeros((VEC_ROWS, VEC_COLS), jnp.float32)
        vec = vec.at[0, :].set(bqkv[0])
        vec = vec.at[1, 0:EMBED].set(p['bo'][0])
        vec = vec.at[1, EMBED:2 * EMBED].set(p['g1'][0])
        vec = vec.at[1, 2 * EMBED:3 * EMBED].set(p['beta1'][0])
        vec = vec.at[2, 0:EMBED].set(p['b2'][0])
        vec = vec.at[2, EMBED:2 * EMBED].set(p['g2'][0])
        vec = vec.at[2, 2 * EMBED:3 * EMBED].set(p['beta2'][0])
        vec = vec.at[3, 0:HIDDEN].set(p['b1'][0])
        vec_l.append(vec)
    return (jnp.stack(wqkv_l), jnp.stack(wo_l), jnp.stack(w1_l),
            jnp.stack(w2_l), jnp.stack(vec_l))


def _full_spec(arr):
    n = arr.ndim
    return pl.BlockSpec(arr.shape, lambda b, n=n: (0,) * n)


# ---------------------------- wrapper --------------------------------------------
def transformer_forward(x, mask, layers, w_dec, b_dec):
    """x: (B, L, E) f32, mask: (B, L) f32 (1.0 = padded)."""
    B, L, E = x.shape

    wqkv_s, wo_s, w1_s, w2_s, vec_s = pack_params(layers)
    wdec_pad = jnp.zeros((E, OUT_PAD), jnp.float32).at[:, :N_OUTPUTS].set(w_dec)
    bdec_pad = jnp.zeros((1, OUT_PAD), jnp.float32).at[:, :N_OUTPUTS].set(b_dec)

    # Additive key-padding mask, built once: (B, L, L), -1e9 on padded keys.
    amask = jnp.tile((mask * NEG_INF)[:, None, :], (1, L, 1))

    out = pl.pallas_call(
        fused_forward_kernel,
        out_shape=jax.ShapeDtypeStruct((B, 1, OUT_PAD), jnp.float32),
        grid=(B,),
        in_specs=[
            pl.BlockSpec((1, L, E), lambda b: (b, 0, 0)),     # x (per batch)
            pl.BlockSpec((1, L, L), lambda b: (b, 0, 0)),     # additive mask
            _full_spec(wqkv_s), _full_spec(wo_s), _full_spec(w1_s),
            _full_spec(w2_s), _full_spec(vec_s),
            _full_spec(wdec_pad), _full_spec(bdec_pad),
        ],
        out_specs=pl.BlockSpec((1, 1, OUT_PAD), lambda b: (b, 0, 0)),
        compiler_params=pltpu.CompilerParams(
            dimension_semantics=("parallel",)),
    )(x, amask, wqkv_s, wo_s, w1_s, w2_s, vec_s, wdec_pad, bdec_pad)

    pred = out.reshape(B, OUT_PAD)[:, :N_OUTPUTS]
    return pred      # torch.squeeze(dec_out, 0) is a no-op for B > 1


# ---------------------------- pure-JAX reference ----------------------------------
def ref_forward(x, mask, layers, w_dec, b_dec):
    h = x
    for p in layers:
        B, L, E = h.shape
        qkv = h @ p['wqkv'] + p['bqkv']
        q = qkv[..., :E].reshape(B, L, N_HEADS, HEAD_DIM)
        k = qkv[..., E:2 * E].reshape(B, L, N_HEADS, HEAD_DIM)
        v = qkv[..., 2 * E:].reshape(B, L, N_HEADS, HEAD_DIM)
        s = jnp.einsum('bqhd,bkhd->bhqk', q, k) / math.sqrt(HEAD_DIM)
        s = s + (mask * -1e9)[:, None, None, :]
        s = s - s.max(-1, keepdims=True)
        pmat = jnp.exp(s)
        pmat = pmat / pmat.sum(-1, keepdims=True)
        a = jnp.einsum('bhqk,bkhd->bqhd', pmat, v).reshape(B, L, E)
        a = a @ p['wo'] + p['bo']
        hh = h + a
        mu = hh.mean(-1, keepdims=True)
        var = ((hh - mu) ** 2).mean(-1, keepdims=True)
        hh = (hh - mu) / jnp.sqrt(var + LN_EPS) * p['g1'] + p['beta1']
        ff = jnp.maximum(hh @ p['w1'] + p['b1'], 0.0) @ p['w2'] + p['b2']
        h2 = hh + ff
        mu2 = h2.mean(-1, keepdims=True)
        var2 = ((h2 - mu2) ** 2).mean(-1, keepdims=True)
        h = (h2 - mu2) / jnp.sqrt(var2 + LN_EPS) * p['g2'] + p['beta2']
    return h[:, 0, :] @ w_dec + b_dec


# ---------------------------- parameter init --------------------------------------
def uniform(key, shape, bound):
    return jax.random.uniform(key, shape, jnp.float32, -bound, bound)


def init_encoder_layer_params(key):
    ks = jax.random.split(key, 8)
    ba = 1.0 / math.sqrt(EMBED)
    bf1 = 1.0 / math.sqrt(EMBED)
    bf2 = 1.0 / math.sqrt(HIDDEN)
    return dict(
        wqkv=uniform(ks[0], (EMBED, 3 * EMBED), ba),    # in_proj (pre-transposed)
        bqkv=uniform(ks[1], (1, 3 * EMBED), ba),
        wo=uniform(ks[2], (EMBED, EMBED), ba),          # out_proj (pre-transposed)
        bo=uniform(ks[3], (1, EMBED), ba),
        g1=jnp.ones((1, EMBED), jnp.float32),
        beta1=jnp.zeros((1, EMBED), jnp.float32),
        w1=uniform(ks[4], (EMBED, HIDDEN), bf1),
        b1=uniform(ks[5], (1, HIDDEN), bf1),
        w2=uniform(ks[6], (HIDDEN, EMBED), bf2),
        b2=uniform(ks[7], (1, EMBED), bf2),
        g2=jnp.ones((1, EMBED), jnp.float32),
        beta2=jnp.zeros((1, EMBED), jnp.float32),
    )


# ---------------------------- main --------------------------------------------------
if __name__ == "__main__":
    root = jax.random.PRNGKey(0)
    k_layers, k_dec, k_tab = jax.random.split(root, 3)

    # transformer + decoder parameters
    layer_keys = jax.random.split(k_layers, NUM_LAYERS)
    layers = [init_encoder_layer_params(k) for k in layer_keys]
    bd = 1.0 / math.sqrt(EMBED)
    kd1, kd2 = jax.random.split(k_dec)
    w_dec = uniform(kd1, (EMBED, N_OUTPUTS), bd)
    b_dec = uniform(kd2, (1, N_OUTPUTS), bd)

    # ---- embedding-table glue (the dict-driven part of forward(), plain JAX) ----
    categorical_space = ["cp0", "cp1", "cp2", "cp3"]
    integer_space = ["ip0", "ip1", "ip2", "ip3"]
    mx_range = {k: 16 for k in integer_space}

    tks = jax.random.split(k_tab, 4)
    cat_table = {}
    cat_keys = jax.random.split(tks[0], len(categorical_space) * 3)
    for i, label in enumerate(categorical_space):
        for j, value in enumerate(['', 'off', 'flatten']):
            cat_table[f'{label}_{value}'] = uniform(cat_keys[i * 3 + j], (EMBED,), 1.0)
    reg_table = {label: uniform(k, (KEY_EMBED,), 1.0)
                 for label, k in zip(integer_space, jax.random.split(tks[1], len(integer_space)))}
    val_enc_w = {label: uniform(k, (1, VAL_EMBED), 1.0)
                 for label, k in zip(integer_space, jax.random.split(tks[2], len(integer_space)))}
    val_enc_b = {label: uniform(k, (VAL_EMBED,), 1.0)
                 for label, k in zip(integer_space, jax.random.split(tks[3], len(integer_space)))}

    X_batch = [
        {"cp0": "off", "cp1": "", "ip0": 8, "ip1": 4,
         "cp2": "flatten", "ip2": 2, "cp3": "off", "ip3": 16},
        {"cp0": "", "ip0": 3, "cp1": "flatten", "ip1": 7, "cp2": "off"},
    ]

    embeddings_batch = []
    for X in X_batch:
        embeddings = []
        for key, item in X.items():
            if item == '' and key not in categorical_space:
                continue
            if key in categorical_space and item in ['off', 'flatten', '']:
                embeddings.append(cat_table[f'{key}_{item}'])
            elif key in integer_space:
                scaled_value = (int(item) - 1) / mx_range[key]
                v_in = jnp.array([[float(int(scaled_value))]], jnp.float32)  # matches torch int() cast
                value_embedding = (v_in @ val_enc_w[key] + val_enc_b[key]).reshape(-1)
                embeddings.append(jnp.concatenate([reg_table[key], value_embedding], axis=0))
        embeddings_batch.append(jnp.stack(embeddings))

    max_len = max(e.shape[0] for e in embeddings_batch)
    B = len(embeddings_batch)
    padded = jnp.zeros((B, max_len, EMBED), jnp.float32)
    mask = jnp.ones((B, max_len), jnp.float32)          # 1.0 = padded (True in torch)
    for i, emb in enumerate(embeddings_batch):
        L_i = emb.shape[0]
        padded = padded.at[i, :L_i].set(emb)
        mask = mask.at[i, :L_i].set(0.0)

    # ---- run fused Pallas forward ----
    pred = transformer_forward(padded, mask, layers, w_dec, b_dec)
    pred = jax.block_until_ready(pred)

    # ---- verify against pure-JAX reference ----
    ref = ref_forward(padded, mask, layers, w_dec, b_dec)
    assert pred.shape == (B, N_OUTPUTS)
    err = float(jnp.max(jnp.abs(pred - ref)))
    assert err < 1e-2, f"mismatch vs reference: max abs err {err}"

    print("KERNEL_OK")
</pallas_src>

<mosaic_0001>
module attributes {stable_mosaic.version = 11 : i64} {
  func.func @fused_forward_kernel(%arg0: i32, %arg1: memref<1x8x32xf32, #tpu.memory_space<vmem>>, %arg2: memref<1x8x8xf32, #tpu.memory_space<vmem>>, %arg3: memref<2x32x96xf32, #tpu.memory_space<vmem>>, %arg4: memref<2x32x32xf32, #tpu.memory_space<vmem>>, %arg5: memref<2x32x64xf32, #tpu.memory_space<vmem>>, %arg6: memref<2x64x32xf32, #tpu.memory_space<vmem>>, %arg7: memref<2x4x96xf32, #tpu.memory_space<vmem>>, %arg8: memref<32x128xf32, #tpu.memory_space<vmem>>, %arg9: memref<1x128xf32, #tpu.memory_space<vmem>>, %arg10: memref<1x1x128xf32, #tpu.memory_space<vmem>>) attributes {dimension_semantics = [#tpu.dimension_semantics<parallel>], iteration_bounds = array<i64: 2>, scalar_prefetch = 0 : i64, scratch_operands = 0 : i64, tpu.core_type = #tpu.core_type<tc>, window_params = [{transform_indices = @transform_0, window_bounds = array<i64: 1, 8, 32>}, {transform_indices = @transform_1, window_bounds = array<i64: 1, 8, 8>}, {pipeline_mode = #tpu.pipeline_mode<synchronous>, transform_indices = @transform_2, window_bounds = array<i64: 2, 32, 96>}, {pipeline_mode = #tpu.pipeline_mode<synchronous>, transform_indices = @transform_3, window_bounds = array<i64: 2, 32, 32>}, {pipeline_mode = #tpu.pipeline_mode<synchronous>, transform_indices = @transform_4, window_bounds = array<i64: 2, 32, 64>}, {pipeline_mode = #tpu.pipeline_mode<synchronous>, transform_indices = @transform_5, window_bounds = array<i64: 2, 64, 32>}, {pipeline_mode = #tpu.pipeline_mode<synchronous>, transform_indices = @transform_6, window_bounds = array<i64: 2, 4, 96>}, {pipeline_mode = #tpu.pipeline_mode<synchronous>, transform_indices = @transform_7, window_bounds = array<i64: 32, 128>}, {pipeline_mode = #tpu.pipeline_mode<synchronous>, transform_indices = @transform_8, window_bounds = array<i64: 1, 128>}, {transform_indices = @transform_9, window_bounds = array<i64: 1, 1, 128>}]} {
    %c0 = arith.constant 0 : index
    %c0_0 = arith.constant 0 : index
    %c0_1 = arith.constant 0 : index
    %0 = vector.load %arg1[%c0, %c0_0, %c0_1] : memref<1x8x32xf32, #tpu.memory_space<vmem>>, vector<1x8x32xf32>
    %1 = vector.shape_cast %0 : vector<1x8x32xf32> to vector<8x32xf32>
    %c0_2 = arith.constant 0 : index
    %c0_3 = arith.constant 0 : index
    %c0_4 = arith.constant 0 : index
    %2 = vector.load %arg2[%c0_2, %c0_3, %c0_4] : memref<1x8x8xf32, #tpu.memory_space<vmem>>, vector<1x8x8xf32>
    %3 = vector.shape_cast %2 : vector<1x8x8xf32> to vector<8x8xf32>
    %4 = tpu.concatenate %3, %3, %3, %3 in 0 : vector<8x8xf32>, vector<8x8xf32>, vector<8x8xf32>, vector<8x8xf32> -> vector<32x8xf32>
    %c0_5 = arith.constant 0 : index
    %c0_6 = arith.constant 0 : index
    %c0_7 = arith.constant 0 : index
    %5 = vector.load %arg3[%c0_5, %c0_6, %c0_7] : memref<2x32x96xf32, #tpu.memory_space<vmem>>, vector<1x32x96xf32>
    %6 = vector.shape_cast %5 : vector<1x32x96xf32> to vector<32x96xf32>
    %c0_8 = arith.constant 0 : index
    %c0_9 = arith.constant 0 : index
    %c0_10 = arith.constant 0 : index
    %7 = vector.load %arg4[%c0_8, %c0_9, %c0_10] : memref<2x32x32xf32, #tpu.memory_space<vmem>>, vector<1x32x32xf32>
    %8 = vector.shape_cast %7 : vector<1x32x32xf32> to vector<32x32xf32>
    %c0_11 = arith.constant 0 : index
    %c0_12 = arith.constant 0 : index
    %c0_13 = arith.constant 0 : index
    %9 = vector.load %arg5[%c0_11, %c0_12, %c0_13] : memref<2x32x64xf32, #tpu.memory_space<vmem>>, vector<1x32x64xf32>
    %10 = vector.shape_cast %9 : vector<1x32x64xf32> to vector<32x64xf32>
    %c0_14 = arith.constant 0 : index
    %c0_15 = arith.constant 0 : index
    %c0_16 = arith.constant 0 : index
    %11 = vector.load %arg6[%c0_14, %c0_15, %c0_16] : memref<2x64x32xf32, #tpu.memory_space<vmem>>, vector<1x64x32xf32>
    %12 = vector.shape_cast %11 : vector<1x64x32xf32> to vector<64x32xf32>
    %c0_17 = arith.constant 0 : index
    %c0_18 = arith.constant 0 : index
    %c0_19 = arith.constant 0 : index
    %13 = vector.load %arg7[%c0_17, %c0_18, %c0_19] : memref<2x4x96xf32, #tpu.memory_space<vmem>>, vector<1x4x96xf32>
    %14 = vector.shape_cast %13 : vector<1x4x96xf32> to vector<4x96xf32>
    %15 = vector.extract_strided_slice %14 {offsets = [0, 0], sizes = [1, 96], strides = [1, 1]} : vector<4x96xf32> to vector<1x96xf32>
    %16 = vector.extract_strided_slice %14 {offsets = [1, 0], sizes = [1, 32], strides = [1, 1]} : vector<4x96xf32> to vector<1x32xf32>
    %17 = vector.extract_strided_slice %14 {offsets = [1, 32], sizes = [1, 32], strides = [1, 1]} : vector<4x96xf32> to vector<1x32xf32>
    %18 = vector.extract_strided_slice %14 {offsets = [1, 64], sizes = [1, 32], strides = [1, 1]} : vector<4x96xf32> to vector<1x32xf32>
    %19 = vector.extract_strided_slice %14 {offsets = [2, 0], sizes = [1, 32], strides = [1, 1]} : vector<4x96xf32> to vector<1x32xf32>
    %20 = vector.extract_strided_slice %14 {offsets = [2, 32], sizes = [1, 32], strides = [1, 1]} : vector<4x96xf32> to vector<1x32xf32>
    %21 = vector.extract_strided_slice %14 {offsets = [2, 64], sizes = [1, 32], strides = [1, 1]} : vector<4x96xf32> to vector<1x32xf32>
    %22 = vector.extract_strided_slice %14 {offsets = [3, 0], sizes = [1, 64], strides = [1, 1]} : vector<4x96xf32> to vector<1x64xf32>
    %cst = arith.constant dense<0.000000e+00> : vector<8x96xf32>
    %23 = tpu.matmul %1, %6, %cst {dimension_numbers = #tpu.dot_dimension_numbers<[1], [0], [0], [1], [0, 0, 1, 1], [], []>} : vector<8x32xf32>, vector<32x96xf32>, vector<8x96xf32> -> vector<8x96xf32>
    %24 = vector.broadcast %15 : vector<1x96xf32> to vector<8x96xf32>
    %25 = arith.addf %23, %24 : vector<8x96xf32>
    %26 = vector.extract_strided_slice %25 {offsets = [0, 0], sizes = [8, 8], strides = [1, 1]} : vector<8x96xf32> to vector<8x8xf32>
    %27 = vector.extract_strided_slice %25 {offsets = [0, 32], sizes = [8, 8], strides = [1, 1]} : vector<8x96xf32> to vector<8x8xf32>
    "tpu.trace_start"() <{level = 10 : i32, message = "qd,kd->qk"}> : () -> ()
    %cst_20 = arith.constant dense<0.000000e+00> : vector<8x8xf32>
    %28 = tpu.matmul %26, %27, %cst_20 {dimension_numbers = #tpu.dot_dimension_numbers<[1], [1], [0], [0], [0, 0, 1, 0], [], []>} : vector<8x8xf32>, vector<8x8xf32>, vector<8x8xf32> -> vector<8x8xf32>
    "tpu.trace_stop"() : () -> ()
    %29 = vector.extract_strided_slice %25 {offsets = [0, 8], sizes = [8, 8], strides = [1, 1]} : vector<8x96xf32> to vector<8x8xf32>
    %30 = vector.extract_strided_slice %25 {offsets = [0, 40], sizes = [8, 8], strides = [1, 1]} : vector<8x96xf32> to vector<8x8xf32>
    "tpu.trace_start"() <{level = 10 : i32, message = "qd,kd->qk"}> : () -> ()
    %cst_21 = arith.constant dense<0.000000e+00> : vector<8x8xf32>
    %31 = tpu.matmul %29, %30, %cst_21 {dimension_numbers = #tpu.dot_dimension_numbers<[1], [1], [0], [0], [0, 0, 1, 0], [], []>} : vector<8x8xf32>, vector<8x8xf32>, vector<8x8xf32> -> vector<8x8xf32>
    "tpu.trace_stop"() : () -> ()
    %32 = vector.extract_strided_slice %25 {offsets = [0, 16], sizes = [8, 8], strides = [1, 1]} : vector<8x96xf32> to vector<8x8xf32>
    %33 = vector.extract_strided_slice %25 {offsets = [0, 48], sizes = [8, 8], strides = [1, 1]} : vector<8x96xf32> to vector<8x8xf32>
    "tpu.trace_start"() <{level = 10 : i32, message = "qd,kd->qk"}> : () -> ()
    %cst_22 = arith.constant dense<0.000000e+00> : vector<8x8xf32>
    %34 = tpu.matmul %32, %33, %cst_22 {dimension_numbers = #tpu.dot_dimension_numbers<[1], [1], [0], [0], [0, 0, 1, 0], [], []>} : vector<8x8xf32>, vector<8x8xf32>, vector<8x8xf32> -> vector<8x8xf32>
    "tpu.trace_stop"() : () -> ()
    %35 = vector.extract_strided_slice %25 {offsets = [0, 24], sizes = [8, 8], strides = [1, 1]} : vector<8x96xf32> to vector<8x8xf32>
    %36 = vector.extract_strided_slice %25 {offsets = [0, 56], sizes = [8, 8], strides = [1, 1]} : vector<8x96xf32> to vector<8x8xf32>
    "tpu.trace_start"() <{level = 10 : i32, message = "qd,kd->qk"}> : () -> ()
    %cst_23 = arith.constant dense<0.000000e+00> : vector<8x8xf32>
    %37 = tpu.matmul %35, %36, %cst_23 {dimension_numbers = #tpu.dot_dimension_numbers<[1], [1], [0], [0], [0, 0, 1, 0], [], []>} : vector<8x8xf32>, vector<8x8xf32>, vector<8x8xf32> -> vector<8x8xf32>
    "tpu.trace_stop"() : () -> ()
    %38 = tpu.concatenate %28, %31, %34, %37 in 0 : vector<8x8xf32>, vector<8x8xf32>, vector<8x8xf32>, vector<8x8xf32> -> vector<32x8xf32>
    %39 = arith.addf %38, %4 : vector<32x8xf32>
    %cst_24 = arith.constant dense<0xFF800000> : vector<32xf32>
    %40 = vector.multi_reduction <maximumf>, %39, %cst_24 [1] : vector<32x8xf32> to vector<32xf32>
    %41 = vector.shape_cast %40 : vector<32xf32> to vector<32x1xf32>
    %42 = vector.broadcast %41 : vector<32x1xf32> to vector<32x8xf32>
    %43 = arith.subf %39, %42 : vector<32x8xf32>
    %44 = math.exp %43 : vector<32x8xf32>
    %cst_25 = arith.constant dense<0.000000e+00> : vector<32xf32>
    %45 = vector.multi_reduction <add>, %44, %cst_25 [1] : vector<32x8xf32> to vector<32xf32>
    %46 = vector.shape_cast %45 : vector<32xf32> to vector<32x1xf32>
    %47 = tpu.reciprocal %46 {approx = true} : vector<32x1xf32> -> vector<32x1xf32>
    %48 = vector.broadcast %47 : vector<32x1xf32> to vector<32x8xf32>
    %49 = arith.mulf %44, %48 : vector<32x8xf32>
    %cst_26 = arith.constant 0.000000e+00 : f32
    %50 = vector.broadcast %cst_26 : f32 to vector<8x32xf32>
    %51 = vector.extract_strided_slice %25 {offsets = [0, 64], sizes = [8, 8], strides = [1, 1]} : vector<8x96xf32> to vector<8x8xf32>
    %52 = vector.extract_strided_slice %49 {offsets = [0, 0], sizes = [8, 8], strides = [1, 1]} : vector<32x8xf32> to vector<8x8xf32>
    %cst_27 = arith.constant dense<0.000000e+00> : vector<8x8xf32>
    %53 = tpu.matmul %52, %51, %cst_27 {dimension_numbers = #tpu.dot_dimension_numbers<[1], [0], [0], [1], [0, 0, 1, 1], [], []>} : vector<8x8xf32>, vector<8x8xf32>, vector<8x8xf32> -> vector<8x8xf32>
    %54 = vector.extract_strided_slice %8 {offsets = [0, 0], sizes = [8, 32], strides = [1, 1]} : vector<32x32xf32> to vector<8x32xf32>
    %cst_28 = arith.constant dense<0.000000e+00> : vector<8x32xf32>
    %55 = tpu.matmul %53, %54, %cst_28 {dimension_numbers = #tpu.dot_dimension_numbers<[1], [0], [0], [1], [0, 0, 1, 1], [], []>} : vector<8x8xf32>, vector<8x32xf32>, vector<8x32xf32> -> vector<8x32xf32>
    %56 = arith.addf %50, %55 : vector<8x32xf32>
    %57 = vector.extract_strided_slice %25 {offsets = [0, 72], sizes = [8, 8], strides = [1, 1]} : vector<8x96xf32> to vector<8x8xf32>
    %58 = vector.extract_strided_slice %49 {offsets = [8, 0], sizes = [8, 8], strides = [1, 1]} : vector<32x8xf32> to vector<8x8xf32>
    %cst_29 = arith.constant dense<0.000000e+00> : vector<8x8xf32>
    %59 = tpu.matmul %58, %57, %cst_29 {dimension_numbers = #tpu.dot_dimension_numbers<[1], [0], [0], [1], [0, 0, 1, 1], [], []>} : vector<8x8xf32>, vector<8x8xf32>, vector<8x8xf32> -> vector<8x8xf32>
    %60 = vector.extract_strided_slice %8 {offsets = [8, 0], sizes = [8, 32], strides = [1, 1]} : vector<32x32xf32> to vector<8x32xf32>
    %cst_30 = arith.constant dense<0.000000e+00> : vector<8x32xf32>
    %61 = tpu.matmul %59, %60, %cst_30 {dimension_numbers = #tpu.dot_dimension_numbers<[1], [0], [0], [1], [0, 0, 1, 1], [], []>} : vector<8x8xf32>, vector<8x32xf32>, vector<8x32xf32> -> vector<8x32xf32>
    %62 = arith.addf %56, %61 : vector<8x32xf32>
    %63 = vector.extract_strided_slice %25 {offsets = [0, 80], sizes = [8, 8], strides = [1, 1]} : vector<8x96xf32> to vector<8x8xf32>
    %64 = vector.extract_strided_slice %49 {offsets = [16, 0], sizes = [8, 8], strides = [1, 1]} : vector<32x8xf32> to vector<8x8xf32>
    %cst_31 = arith.constant dense<0.000000e+00> : vector<8x8xf32>
    %65 = tpu.matmul %64, %63, %cst_31 {dimension_numbers = #tpu.dot_dimension_numbers<[1], [0], [0], [1], [0, 0, 1, 1], [], []>} : vector<8x8xf32>, vector<8x8xf32>, vector<8x8xf32> -> vector<8x8xf32>
    %66 = vector.extract_strided_slice %8 {offsets = [16, 0], sizes = [8, 32], strides = [1, 1]} : vector<32x32xf32> to vector<8x32xf32>
    %cst_32 = arith.constant dense<0.000000e+00> : vector<8x32xf32>
    %67 = tpu.matmul %65, %66, %cst_32 {dimension_numbers = #tpu.dot_dimension_numbers<[1], [0], [0], [1], [0, 0, 1, 1], [], []>} : vector<8x8xf32>, vector<8x32xf32>, vector<8x32xf32> -> vector<8x32xf32>
    %68 = arith.addf %62, %67 : vector<8x32xf32>
    %69 = vector.extract_strided_slice %25 {offsets = [0, 88], sizes = [8, 8], strides = [1, 1]} : vector<8x96xf32> to vector<8x8xf32>
    %70 = vector.extract_strided_slice %49 {offsets = [24, 0], sizes = [8, 8], strides = [1, 1]} : vector<32x8xf32> to vector<8x8xf32>
    %cst_33 = arith.constant dense<0.000000e+00> : vector<8x8xf32>
    %71 = tpu.matmul %70, %69, %cst_33 {dimension_numbers = #tpu.dot_dimension_numbers<[1], [0], [0], [1], [0, 0, 1, 1], [], []>} : vector<8x8xf32>, vector<8x8xf32>, vector<8x8xf32> -> vector<8x8xf32>
    %72 = vector.extract_strided_slice %8 {offsets = [24, 0], sizes = [8, 32], strides = [1, 1]} : vector<32x32xf32> to vector<8x32xf32>
    %cst_34 = arith.constant dense<0.000000e+00> : vector<8x32xf32>
    %73 = tpu.matmul %71, %72, %cst_34 {dimension_numbers = #tpu.dot_dimension_numbers<[1], [0], [0], [1], [0, 0, 1, 1], [], []>} : vector<8x8xf32>, vector<8x32xf32>, vector<8x32xf32> -> vector<8x32xf32>
    %74 = arith.addf %68, %73 : vector<8x32xf32>
    %75 = vector.broadcast %16 : vector<1x32xf32> to vector<8x32xf32>
    %76 = arith.addf %74, %75 : vector<8x32xf32>
    %77 = arith.addf %1, %76 : vector<8x32xf32>
    %cst_35 = arith.constant dense<0.000000e+00> : vector<8xf32>
    %78 = vector.multi_reduction <add>, %77, %cst_35 [1] : vector<8x32xf32> to vector<8xf32>
    %79 = vector.shape_cast %78 : vector<8xf32> to vector<8x1xf32>
    %cst_36 = arith.constant 3.200000e+01 : f32
    %80 = vector.broadcast %cst_36 : f32 to vector<8x1xf32>
    %81 = arith.divf %79, %80 : vector<8x1xf32>
    %82 = vector.broadcast %81 : vector<8x1xf32> to vector<8x32xf32>
    %83 = arith.subf %77, %82 : vector<8x32xf32>
    %84 = arith.mulf %83, %83 : vector<8x32xf32>
    %cst_37 = arith.constant dense<0.000000e+00> : vector<8xf32>
    %85 = vector.multi_reduction <add>, %84, %cst_37 [1] : vector<8x32xf32> to vector<8xf32>
    %86 = vector.shape_cast %85 : vector<8xf32> to vector<8x1xf32>
    %cst_38 = arith.constant 3.200000e+01 : f32
    %87 = vector.broadcast %cst_38 : f32 to vector<8x1xf32>
    %88 = arith.divf %86, %87 : vector<8x1xf32>
    %89 = vector.broadcast %81 : vector<8x1xf32> to vector<8x32xf32>
    %90 = arith.subf %77, %89 : vector<8x32xf32>
    %cst_39 = arith.constant 9.99999974E-6 : f32
    %91 = vector.broadcast %cst_39 : f32 to vector<8x1xf32>
    %92 = arith.addf %88, %91 : vector<8x1xf32>
    %93 = math.rsqrt %92 : vector<8x1xf32>
    %94 = vector.broadcast %93 : vector<8x1xf32> to vector<8x32xf32>
    %95 = arith.mulf %90, %94 : vector<8x32xf32>
    %96 = vector.broadcast %17 : vector<1x32xf32> to vector<8x32xf32>
    %97 = arith.mulf %95, %96 : vector<8x32xf32>
    %98 = vector.broadcast %18 : vector<1x32xf32> to vector<8x32xf32>
    %99 = arith.addf %97, %98 : vector<8x32xf32>
    %cst_40 = arith.constant dense<0.000000e+00> : vector<8x64xf32>
    %100 = tpu.matmul %99, %10, %cst_40 {dimension_numbers = #tpu.dot_dimension_numbers<[1], [0], [0], [1], [0, 0, 1, 1], [], []>} : vector<8x32xf32>, vector<32x64xf32>, vector<8x64xf32> -> vector<8x64xf32>
    %101 = vector.broadcast %22 : vector<1x64xf32> to vector<8x64xf32>
    %102 = arith.addf %100, %101 : vector<8x64xf32>
    %cst_41 = arith.constant 0.000000e+00 : f32
    %103 = vector.broadcast %cst_41 : f32 to vector<8x64xf32>
    %104 = arith.maximumf %102, %103 : vector<8x64xf32>
    %cst_42 = arith.constant dense<0.000000e+00> : vector<8x32xf32>
    %105 = tpu.matmul %104, %12, %cst_42 {dimension_numbers = #tpu.dot_dimension_numbers<[1], [0], [0], [1], [0, 0, 1, 1], [], []>} : vector<8x64xf32>, vector<64x32xf32>, vector<8x32xf32> -> vector<8x32xf32>
    %106 = vector.broadcast %19 : vector<1x32xf32> to vector<8x32xf32>
    %107 = arith.addf %105, %106 : vector<8x32xf32>
    %108 = arith.addf %99, %107 : vector<8x32xf32>
    %cst_43 = arith.constant dense<0.000000e+00> : vector<8xf32>
    %109 = vector.multi_reduction <add>, %108, %cst_43 [1] : vector<8x32xf32> to vector<8xf32>
    %110 = vector.shape_cast %109 : vector<8xf32> to vector<8x1xf32>
    %cst_44 = arith.constant 3.200000e+01 : f32
    %111 = vector.broadcast %cst_44 : f32 to vector<8x1xf32>
    %112 = arith.divf %110, %111 : vector<8x1xf32>
    %113 = vector.broadcast %112 : vector<8x1xf32> to vector<8x32xf32>
    %114 = arith.subf %108, %113 : vector<8x32xf32>
    %115 = arith.mulf %114, %114 : vector<8x32xf32>
    %cst_45 = arith.constant dense<0.000000e+00> : vector<8xf32>
    %116 = vector.multi_reduction <add>, %115, %cst_45 [1] : vector<8x32xf32> to vector<8xf32>
    %117 = vector.shape_cast %116 : vector<8xf32> to vector<8x1xf32>
    %cst_46 = arith.constant 3.200000e+01 : f32
    %118 = vector.broadcast %cst_46 : f32 to vector<8x1xf32>
    %119 = arith.divf %117, %118 : vector<8x1xf32>
    %120 = vector.broadcast %112 : vector<8x1xf32> to vector<8x32xf32>
    %121 = arith.subf %108, %120 : vector<8x32xf32>
    %cst_47 = arith.constant 9.99999974E-6 : f32
    %122 = vector.broadcast %cst_47 : f32 to vector<8x1xf32>
    %123 = arith.addf %119, %122 : vector<8x1xf32>
    %124 = math.rsqrt %123 : vector<8x1xf32>
    %125 = vector.broadcast %124 : vector<8x1xf32> to vector<8x32xf32>
    %126 = arith.mulf %121, %125 : vector<8x32xf32>
    %127 = vector.broadcast %20 : vector<1x32xf32> to vector<8x32xf32>
    %128 = arith.mulf %126, %127 : vector<8x32xf32>
    %129 = vector.broadcast %21 : vector<1x32xf32> to vector<8x32xf32>
    %130 = arith.addf %128, %129 : vector<8x32xf32>
    %c1 = arith.constant 1 : index
    %c0_48 = arith.constant 0 : index
    %c0_49 = arith.constant 0 : index
    %131 = vector.load %arg3[%c1, %c0_48, %c0_49] : memref<2x32x96xf32, #tpu.memory_space<vmem>>, vector<1x32x96xf32>
    %132 = vector.shape_cast %131 : vector<1x32x96xf32> to vector<32x96xf32>
    %c1_50 = arith.constant 1 : index
    %c0_51 = arith.constant 0 : index
    %c0_52 = arith.constant 0 : index
    %133 = vector.load %arg4[%c1_50, %c0_51, %c0_52] : memref<2x32x32xf32, #tpu.memory_space<vmem>>, vector<1x32x32xf32>
    %134 = vector.shape_cast %133 : vector<1x32x32xf32> to vector<32x32xf32>
    %c1_53 = arith.constant 1 : index
    %c0_54 = arith.constant 0 : index
    %c0_55 = arith.constant 0 : index
    %135 = vector.load %arg5[%c1_53, %c0_54, %c0_55] : memref<2x32x64xf32, #tpu.memory_space<vmem>>, vector<1x32x64xf32>
    %136 = vector.shape_cast %135 : vector<1x32x64xf32> to vector<32x64xf32>
    %c1_56 = arith.constant 1 : index
    %c0_57 = arith.constant 0 : index
    %c0_58 = arith.constant 0 : index
    %137 = vector.load %arg6[%c1_56, %c0_57, %c0_58] : memref<2x64x32xf32, #tpu.memory_space<vmem>>, vector<1x64x32xf32>
    %138 = vector.shape_cast %137 : vector<1x64x32xf32> to vector<64x32xf32>
    %c1_59 = arith.constant 1 : index
    %c0_60 = arith.constant 0 : index
    %c0_61 = arith.constant 0 : index
    %139 = vector.load %arg7[%c1_59, %c0_60, %c0_61] : memref<2x4x96xf32, #tpu.memory_space<vmem>>, vector<1x4x96xf32>
    %140 = vector.shape_cast %139 : vector<1x4x96xf32> to vector<4x96xf32>
    %141 = vector.extract_strided_slice %140 {offsets = [0, 0], sizes = [1, 96], strides = [1, 1]} : vector<4x96xf32> to vector<1x96xf32>
    %142 = vector.extract_strided_slice %140 {offsets = [1, 0], sizes = [1, 32], strides = [1, 1]} : vector<4x96xf32> to vector<1x32xf32>
    %143 = vector.extract_strided_slice %140 {offsets = [1, 32], sizes = [1, 32], strides = [1, 1]} : vector<4x96xf32> to vector<1x32xf32>
    %144 = vector.extract_strided_slice %140 {offsets = [1, 64], sizes = [1, 32], strides = [1, 1]} : vector<4x96xf32> to vector<1x32xf32>
    %145 = vector.extract_strided_slice %140 {offsets = [2, 0], sizes = [1, 32], strides = [1, 1]} : vector<4x96xf32> to vector<1x32xf32>
    %146 = vector.extract_strided_slice %140 {offsets = [2, 32], sizes = [1, 32], strides = [1, 1]} : vector<4x96xf32> to vector<1x32xf32>
    %147 = vector.extract_strided_slice %140 {offsets = [2, 64], sizes = [1, 32], strides = [1, 1]} : vector<4x96xf32> to vector<1x32xf32>
    %148 = vector.extract_strided_slice %140 {offsets = [3, 0], sizes = [1, 64], strides = [1, 1]} : vector<4x96xf32> to vector<1x64xf32>
    %cst_62 = arith.constant dense<0.000000e+00> : vector<8x96xf32>
    %149 = tpu.matmul %130, %132, %cst_62 {dimension_numbers = #tpu.dot_dimension_numbers<[1], [0], [0], [1], [0, 0, 1, 1], [], []>} : vector<8x32xf32>, vector<32x96xf32>, vector<8x96xf32> -> vector<8x96xf32>
    %150 = vector.broadcast %141 : vector<1x96xf32> to vector<8x96xf32>
    %151 = arith.addf %149, %150 : vector<8x96xf32>
    %152 = vector.extract_strided_slice %151 {offsets = [0, 0], sizes = [8, 8], strides = [1, 1]} : vector<8x96xf32> to vector<8x8xf32>
    %153 = vector.extract_strided_slice %151 {offsets = [0, 32], sizes = [8, 8], strides = [1, 1]} : vector<8x96xf32> to vector<8x8xf32>
    "tpu.trace_start"() <{level = 10 : i32, message = "qd,kd->qk"}> : () -> ()
    %cst_63 = arith.constant dense<0.000000e+00> : vector<8x8xf32>
    %154 = tpu.matmul %152, %153, %cst_63 {dimension_numbers = #tpu.dot_dimension_numbers<[1], [1], [0], [0], [0, 0, 1, 0], [], []>} : vector<8x8xf32>, vector<8x8xf32>, vector<8x8xf32> -> vector<8x8xf32>
    "tpu.trace_stop"() : () -> ()
    %155 = vector.extract_strided_slice %151 {offsets = [0, 8], sizes = [8, 8], strides = [1, 1]} : vector<8x96xf32> to vector<8x8xf32>
    %156 = vector.extract_strided_slice %151 {offsets = [0, 40], sizes = [8, 8], strides = [1, 1]} : vector<8x96xf32> to vector<8x8xf32>
    "tpu.trace_start"() <{level = 10 : i32, message = "qd,kd->qk"}> : () -> ()
    %cst_64 = arith.constant dense<0.000000e+00> : vector<8x8xf32>
    %157 = tpu.matmul %155, %156, %cst_64 {dimension_numbers = #tpu.dot_dimension_numbers<[1], [1], [0], [0], [0, 0, 1, 0], [], []>} : vector<8x8xf32>, vector<8x8xf32>, vector<8x8xf32> -> vector<8x8xf32>
    "tpu.trace_stop"() : () -> ()
    %158 = vector.extract_strided_slice %151 {offsets = [0, 16], sizes = [8, 8], strides = [1, 1]} : vector<8x96xf32> to vector<8x8xf32>
    %159 = vector.extract_strided_slice %151 {offsets = [0, 48], sizes = [8, 8], strides = [1, 1]} : vector<8x96xf32> to vector<8x8xf32>
    "tpu.trace_start"() <{level = 10 : i32, message = "qd,kd->qk"}> : () -> ()
    %cst_65 = arith.constant dense<0.000000e+00> : vector<8x8xf32>
    %160 = tpu.matmul %158, %159, %cst_65 {dimension_numbers = #tpu.dot_dimension_numbers<[1], [1], [0], [0], [0, 0, 1, 0], [], []>} : vector<8x8xf32>, vector<8x8xf32>, vector<8x8xf32> -> vector<8x8xf32>
    "tpu.trace_stop"() : () -> ()
    %161 = vector.extract_strided_slice %151 {offsets = [0, 24], sizes = [8, 8], strides = [1, 1]} : vector<8x96xf32> to vector<8x8xf32>
    %162 = vector.extract_strided_slice %151 {offsets = [0, 56], sizes = [8, 8], strides = [1, 1]} : vector<8x96xf32> to vector<8x8xf32>
    "tpu.trace_start"() <{level = 10 : i32, message = "qd,kd->qk"}> : () -> ()
    %cst_66 = arith.constant dense<0.000000e+00> : vector<8x8xf32>
    %163 = tpu.matmul %161, %162, %cst_66 {dimension_numbers = #tpu.dot_dimension_numbers<[1], [1], [0], [0], [0, 0, 1, 0], [], []>} : vector<8x8xf32>, vector<8x8xf32>, vector<8x8xf32> -> vector<8x8xf32>
    "tpu.trace_stop"() : () -> ()
    %164 = tpu.concatenate %154, %157, %160, %163 in 0 : vector<8x8xf32>, vector<8x8xf32>, vector<8x8xf32>, vector<8x8xf32> -> vector<32x8xf32>
    %165 = arith.addf %164, %4 : vector<32x8xf32>
    %cst_67 = arith.constant dense<0xFF800000> : vector<32xf32>
    %166 = vector.multi_reduction <maximumf>, %165, %cst_67 [1] : vector<32x8xf32> to vector<32xf32>
    %167 = vector.shape_cast %166 : vector<32xf32> to vector<32x1xf32>
    %168 = vector.broadcast %167 : vector<32x1xf32> to vector<32x8xf32>
    %169 = arith.subf %165, %168 : vector<32x8xf32>
    %170 = math.exp %169 : vector<32x8xf32>
    %cst_68 = arith.constant dense<0.000000e+00> : vector<32xf32>
    %171 = vector.multi_reduction <add>, %170, %cst_68 [1] : vector<32x8xf32> to vector<32xf32>
    %172 = vector.shape_cast %171 : vector<32xf32> to vector<32x1xf32>
    %173 = tpu.reciprocal %172 {approx = true} : vector<32x1xf32> -> vector<32x1xf32>
    %174 = vector.broadcast %173 : vector<32x1xf32> to vector<32x8xf32>
    %175 = arith.mulf %170, %174 : vector<32x8xf32>
    %cst_69 = arith.constant 0.000000e+00 : f32
    %176 = vector.broadcast %cst_69 : f32 to vector<8x32xf32>
    %177 = vector.extract_strided_slice %151 {offsets = [0, 64], sizes = [8, 8], strides = [1, 1]} : vector<8x96xf32> to vector<8x8xf32>
    %178 = vector.extract_strided_slice %175 {offsets = [0, 0], sizes = [8, 8], strides = [1, 1]} : vector<32x8xf32> to vector<8x8xf32>
    %cst_70 = arith.constant dense<0.000000e+00> : vector<8x8xf32>
    %179 = tpu.matmul %178, %177, %cst_70 {dimension_numbers = #tpu.dot_dimension_numbers<[1], [0], [0], [1], [0, 0, 1, 1], [], []>} : vector<8x8xf32>, vector<8x8xf32>, vector<8x8xf32> -> vector<8x8xf32>
    %180 = vector.extract_strided_slice %134 {offsets = [0, 0], sizes = [8, 32], strides = [1, 1]} : vector<32x32xf32> to vector<8x32xf32>
    %cst_71 = arith.constant dense<0.000000e+00> : vector<8x32xf32>
    %181 = tpu.matmul %179, %180, %cst_71 {dimension_numbers = #tpu.dot_dimension_numbers<[1], [0], [0], [1], [0, 0, 1, 1], [], []>} : vector<8x8xf32>, vector<8x32xf32>, vector<8x32xf32> -> vector<8x32xf32>
    %182 = arith.addf %176, %181 : vector<8x32xf32>
    %183 = vector.extract_strided_slice %151 {offsets = [0, 72], sizes = [8, 8], strides = [1, 1]} : vector<8x96xf32> to vector<8x8xf32>
    %184 = vector.extract_strided_slice %175 {offsets = [8, 0], sizes = [8, 8], strides = [1, 1]} : vector<32x8xf32> to vector<8x8xf32>
    %cst_72 = arith.constant dense<0.000000e+00> : vector<8x8xf32>
    %185 = tpu.matmul %184, %183, %cst_72 {dimension_numbers = #tpu.dot_dimension_numbers<[1], [0], [0], [1], [0, 0, 1, 1], [], []>} : vector<8x8xf32>, vector<8x8xf32>, vector<8x8xf32> -> vector<8x8xf32>
    %186 = vector.extract_strided_slice %134 {offsets = [8, 0], sizes = [8, 32], strides = [1, 1]} : vector<32x32xf32> to vector<8x32xf32>
    %cst_73 = arith.constant dense<0.000000e+00> : vector<8x32xf32>
    %187 = tpu.matmul %185, %186, %cst_73 {dimension_numbers = #tpu.dot_dimension_numbers<[1], [0], [0], [1], [0, 0, 1, 1], [], []>} : vector<8x8xf32>, vector<8x32xf32>, vector<8x32xf32> -> vector<8x32xf32>
    %188 = arith.addf %182, %187 : vector<8x32xf32>
    %189 = vector.extract_strided_slice %151 {offsets = [0, 80], sizes = [8, 8], strides = [1, 1]} : vector<8x96xf32> to vector<8x8xf32>
    %190 = vector.extract_strided_slice %175 {offsets = [16, 0], sizes = [8, 8], strides = [1, 1]} : vector<32x8xf32> to vector<8x8xf32>
    %cst_74 = arith.constant dense<0.000000e+00> : vector<8x8xf32>
    %191 = tpu.matmul %190, %189, %cst_74 {dimension_numbers = #tpu.dot_dimension_numbers<[1], [0], [0], [1], [0, 0, 1, 1], [], []>} : vector<8x8xf32>, vector<8x8xf32>, vector<8x8xf32> -> vector<8x8xf32>
    %192 = vector.extract_strided_slice %134 {offsets = [16, 0], sizes = [8, 32], strides = [1, 1]} : vector<32x32xf32> to vector<8x32xf32>
    %cst_75 = arith.constant dense<0.000000e+00> : vector<8x32xf32>
    %193 = tpu.matmul %191, %192, %cst_75 {dimension_numbers = #tpu.dot_dimension_numbers<[1], [0], [0], [1], [0, 0, 1, 1], [], []>} : vector<8x8xf32>, vector<8x32xf32>, vector<8x32xf32> -> vector<8x32xf32>
    %194 = arith.addf %188, %193 : vector<8x32xf32>
    %195 = vector.extract_strided_slice %151 {offsets = [0, 88], sizes = [8, 8], strides = [1, 1]} : vector<8x96xf32> to vector<8x8xf32>
    %196 = vector.extract_strided_slice %175 {offsets = [24, 0], sizes = [8, 8], strides = [1, 1]} : vector<32x8xf32> to vector<8x8xf32>
    %cst_76 = arith.constant dense<0.000000e+00> : vector<8x8xf32>
    %197 = tpu.matmul %196, %195, %cst_76 {dimension_numbers = #tpu.dot_dimension_numbers<[1], [0], [0], [1], [0, 0, 1, 1], [], []>} : vector<8x8xf32>, vector<8x8xf32>, vector<8x8xf32> -> vector<8x8xf32>
    %198 = vector.extract_strided_slice %134 {offsets = [24, 0], sizes = [8, 32], strides = [1, 1]} : vector<32x32xf32> to vector<8x32xf32>
    %cst_77 = arith.constant dense<0.000000e+00> : vector<8x32xf32>
    %199 = tpu.matmul %197, %198, %cst_77 {dimension_numbers = #tpu.dot_dimension_numbers<[1], [0], [0], [1], [0, 0, 1, 1], [], []>} : vector<8x8xf32>, vector<8x32xf32>, vector<8x32xf32> -> vector<8x32xf32>
    %200 = arith.addf %194, %199 : vector<8x32xf32>
    %201 = vector.broadcast %142 : vector<1x32xf32> to vector<8x32xf32>
    %202 = arith.addf %200, %201 : vector<8x32xf32>
    %203 = arith.addf %130, %202 : vector<8x32xf32>
    %cst_78 = arith.constant dense<0.000000e+00> : vector<8xf32>
    %204 = vector.multi_reduction <add>, %203, %cst_78 [1] : vector<8x32xf32> to vector<8xf32>
    %205 = vector.shape_cast %204 : vector<8xf32> to vector<8x1xf32>
    %cst_79 = arith.constant 3.200000e+01 : f32
    %206 = vector.broadcast %cst_79 : f32 to vector<8x1xf32>
    %207 = arith.divf %205, %206 : vector<8x1xf32>
    %208 = vector.broadcast %207 : vector<8x1xf32> to vector<8x32xf32>
    %209 = arith.subf %203, %208 : vector<8x32xf32>
    %210 = arith.mulf %209, %209 : vector<8x32xf32>
    %cst_80 = arith.constant dense<0.000000e+00> : vector<8xf32>
    %211 = vector.multi_reduction <add>, %210, %cst_80 [1] : vector<8x32xf32> to vector<8xf32>
    %212 = vector.shape_cast %211 : vector<8xf32> to vector<8x1xf32>
    %cst_81 = arith.constant 3.200000e+01 : f32
    %213 = vector.broadcast %cst_81 : f32 to vector<8x1xf32>
    %214 = arith.divf %212, %213 : vector<8x1xf32>
    %215 = vector.broadcast %207 : vector<8x1xf32> to vector<8x32xf32>
    %216 = arith.subf %203, %215 : vector<8x32xf32>
    %cst_82 = arith.constant 9.99999974E-6 : f32
    %217 = vector.broadcast %cst_82 : f32 to vector<8x1xf32>
    %218 = arith.addf %214, %217 : vector<8x1xf32>
    %219 = math.rsqrt %218 : vector<8x1xf32>
    %220 = vector.broadcast %219 : vector<8x1xf32> to vector<8x32xf32>
    %221 = arith.mulf %216, %220 : vector<8x32xf32>
    %222 = vector.broadcast %143 : vector<1x32xf32> to vector<8x32xf32>
    %223 = arith.mulf %221, %222 : vector<8x32xf32>
    %224 = vector.broadcast %144 : vector<1x32xf32> to vector<8x32xf32>
    %225 = arith.addf %223, %224 : vector<8x32xf32>
    %cst_83 = arith.constant dense<0.000000e+00> : vector<8x64xf32>
    %226 = tpu.matmul %225, %136, %cst_83 {dimension_numbers = #tpu.dot_dimension_numbers<[1], [0], [0], [1], [0, 0, 1, 1], [], []>} : vector<8x32xf32>, vector<32x64xf32>, vector<8x64xf32> -> vector<8x64xf32>
    %227 = vector.broadcast %148 : vector<1x64xf32> to vector<8x64xf32>
    %228 = arith.addf %226, %227 : vector<8x64xf32>
    %cst_84 = arith.constant 0.000000e+00 : f32
    %229 = vector.broadcast %cst_84 : f32 to vector<8x64xf32>
    %230 = arith.maximumf %228, %229 : vector<8x64xf32>
    %cst_85 = arith.constant dense<0.000000e+00> : vector<8x32xf32>
    %231 = tpu.matmul %230, %138, %cst_85 {dimension_numbers = #tpu.dot_dimension_numbers<[1], [0], [0], [1], [0, 0, 1, 1], [], []>} : vector<8x64xf32>, vector<64x32xf32>, vector<8x32xf32> -> vector<8x32xf32>
    %232 = vector.broadcast %145 : vector<1x32xf32> to vector<8x32xf32>
    %233 = arith.addf %231, %232 : vector<8x32xf32>
    %234 = arith.addf %225, %233 : vector<8x32xf32>
    %cst_86 = arith.constant dense<0.000000e+00> : vector<8xf32>
    %235 = vector.multi_reduction <add>, %234, %cst_86 [1] : vector<8x32xf32> to vector<8xf32>
    %236 = vector.shape_cast %235 : vector<8xf32> to vector<8x1xf32>
    %cst_87 = arith.constant 3.200000e+01 : f32
    %237 = vector.broadcast %cst_87 : f32 to vector<8x1xf32>
    %238 = arith.divf %236, %237 : vector<8x1xf32>
    %239 = vector.broadcast %238 : vector<8x1xf32> to vector<8x32xf32>
    %240 = arith.subf %234, %239 : vector<8x32xf32>
    %241 = arith.mulf %240, %240 : vector<8x32xf32>
    %cst_88 = arith.constant dense<0.000000e+00> : vector<8xf32>
    %242 = vector.multi_reduction <add>, %241, %cst_88 [1] : vector<8x32xf32> to vector<8xf32>
    %243 = vector.shape_cast %242 : vector<8xf32> to vector<8x1xf32>
    %cst_89 = arith.constant 3.200000e+01 : f32
    %244 = vector.broadcast %cst_89 : f32 to vector<8x1xf32>
    %245 = arith.divf %243, %244 : vector<8x1xf32>
    %246 = vector.broadcast %238 : vector<8x1xf32> to vector<8x32xf32>
    %247 = arith.subf %234, %246 : vector<8x32xf32>
    %cst_90 = arith.constant 9.99999974E-6 : f32
    %248 = vector.broadcast %cst_90 : f32 to vector<8x1xf32>
    %249 = arith.addf %245, %248 : vector<8x1xf32>
    %250 = math.rsqrt %249 : vector<8x1xf32>
    %251 = vector.broadcast %250 : vector<8x1xf32> to vector<8x32xf32>
    %252 = arith.mulf %247, %251 : vector<8x32xf32>
    %253 = vector.broadcast %146 : vector<1x32xf32> to vector<8x32xf32>
    %254 = arith.mulf %252, %253 : vector<8x32xf32>
    %255 = vector.broadcast %147 : vector<1x32xf32> to vector<8x32xf32>
    %256 = arith.addf %254, %255 : vector<8x32xf32>
    %257 = vector.extract_strided_slice %256 {offsets = [0, 0], sizes = [1, 32], strides = [1, 1]} : vector<8x32xf32> to vector<1x32xf32>
    %c0_91 = arith.constant 0 : index
    %c0_92 = arith.constant 0 : index
    %258 = vector.load %arg8[%c0_91, %c0_92] : memref<32x128xf32, #tpu.memory_space<vmem>>, vector<32x128xf32>
    %cst_93 = arith.constant dense<0.000000e+00> : vector<1x128xf32>
    %259 = tpu.matmul %257, %258, %cst_93 {dimension_numbers = #tpu.dot_dimension_numbers<[1], [0], [0], [1], [0, 0, 1, 1], [], []>} : vector<1x32xf32>, vector<32x128xf32>, vector<1x128xf32> -> vector<1x128xf32>
    %c0_94 = arith.constant 0 : index
    %c0_95 = arith.constant 0 : index
    %260 = vector.load %arg9[%c0_94, %c0_95] : memref<1x128xf32, #tpu.memory_space<vmem>>, vector<1x128xf32>
    %261 = arith.addf %259, %260 : vector<1x128xf32>
    %c0_96 = arith.constant 0 : index
    %c0_97 = arith.constant 0 : index
    %c0_98 = arith.constant 0 : index
    %262 = vector.load %arg10[%c0_96, %c0_97, %c0_98] : memref<1x1x128xf32, #tpu.memory_space<vmem>>, vector<1x1x128xf32>
    %263 = vector.shape_cast %262 : vector<1x1x128xf32> to vector<1x128xf32>
    %264 = vector.shape_cast %261 : vector<1x128xf32> to vector<1x1x128xf32>
    tpu.vector_store %arg10[%c0_96, %c0_97, %c0_98], %264 {strides = array<i32>} : memref<1x1x128xf32, #tpu.memory_space<vmem>>, vector<1x1x128xf32>,
    return
  }
  func.func @transform_0(%arg0: i32) -> (i32, i32, i32) {
    %c0_i32 = arith.constant 0 : i32
    %c0_i32_0 = arith.constant 0 : i32
    %c0_i32_1 = arith.constant 0 : i32
    return %arg0, %c0_i32, %c0_i32_0 : i32, i32, i32
  }
  func.func @transform_1(%arg0: i32) -> (i32, i32, i32) {
    %c0_i32 = arith.constant 0 : i32
    %c0_i32_0 = arith.constant 0 : i32
    %c0_i32_1 = arith.constant 0 : i32
    return %arg0, %c0_i32, %c0_i32_0 : i32, i32, i32
  }
  func.func @transform_2(%arg0: i32) -> (i32, i32, i32) {
    %c0_i32 = arith.constant 0 : i32
    %c0_i32_0 = arith.constant 0 : i32
    %c0_i32_1 = arith.constant 0 : i32
    %c0_i32_2 = arith.constant 0 : i32
    return %c0_i32, %c0_i32_0, %c0_i32_1 : i32, i32, i32
  }
  func.func @transform_3(%arg0: i32) -> (i32, i32, i32) {
    %c0_i32 = arith.constant 0 : i32
    %c0_i32_0 = arith.constant 0 : i32
    %c0_i32_1 = arith.constant 0 : i32
    %c0_i32_2 = arith.constant 0 : i32
    return %c0_i32, %c0_i32_0, %c0_i32_1 : i32, i32, i32
  }
  func.func @transform_4(%arg0: i32) -> (i32, i32, i32) {
    %c0_i32 = arith.constant 0 : i32
    %c0_i32_0 = arith.constant 0 : i32
    %c0_i32_1 = arith.constant 0 : i32
    %c0_i32_2 = arith.constant 0 : i32
    return %c0_i32, %c0_i32_0, %c0_i32_1 : i32, i32, i32
  }
  func.func @transform_5(%arg0: i32) -> (i32, i32, i32) {
    %c0_i32 = arith.constant 0 : i32
    %c0_i32_0 = arith.constant 0 : i32
    %c0_i32_1 = arith.constant 0 : i32
    %c0_i32_2 = arith.constant 0 : i32
    return %c0_i32, %c0_i32_0, %c0_i32_1 : i32, i32, i32
  }
  func.func @transform_6(%arg0: i32) -> (i32, i32, i32) {
    %c0_i32 = arith.constant 0 : i32
    %c0_i32_0 = arith.constant 0 : i32
    %c0_i32_1 = arith.constant 0 : i32
    %c0_i32_2 = arith.constant 0 : i32
    return %c0_i32, %c0_i32_0, %c0_i32_1 : i32, i32, i32
  }
  func.func @transform_7(%arg0: i32) -> (i32, i32) {
    %c0_i32 = arith.constant 0 : i32
    %c0_i32_0 = arith.constant 0 : i32
    %c0_i32_1 = arith.constant 0 : i32
    return %c0_i32, %c0_i32_0 : i32, i32
  }
  func.func @transform_8(%arg0: i32) -> (i32, i32) {
    %c0_i32 = arith.constant 0 : i32
    %c0_i32_0 = arith.constant 0 : i32
    %c0_i32_1 = arith.constant 0 : i32
    return %c0_i32, %c0_i32_0 : i32, i32
  }
  func.func @transform_9(%arg0: i32) -> (i32, i32, i32) {
    %c0_i32 = arith.constant 0 : i32
    %c0_i32_0 = arith.constant 0 : i32
    %c0_i32_1 = arith.constant 0 : i32
    return %arg0, %c0_i32, %c0_i32_0 : i32, i32, i32
  }
}

</mosaic_0001>

<bundles_post_ra>
// kernel: tpu_custom_call.1
= control target key start
LH: loop header
LB: loop body
LE: loop exit
PB: predicated region body
PF: predicated region fallthrough
CT: control target
= control target key end

     0   :  { %s4546_s0 = inlined_call_operand.hbm [shape: f32[2,8,32], index: 0, kind: input, shape index: {}]   ;;  %s4547_s1 = inlined_call_operand.hbm [shape: f32[2,8,8], index: 1, kind: input, shape index: {}]   ;;  %s4548_s2 = inlined_call_operand.vmem [shape: f32[2,32,96], index: 2, kind: input, shape index: {}]   ;;  %s4549_s3 = inlined_call_operand.vmem [shape: f32[2,32,32], index: 3, kind: input, shape index: {}]   ;;  %s4550_s4 = inlined_call_operand.vmem [shape: f32[2,32,64], index: 4, kind: input, shape index: {}]   ;;  %s4551_s5 = inlined_call_operand.vmem [shape: f32[2,64,32], index: 5, kind: input, shape index: {}]   ;;  %s4552_s6 = inlined_call_operand.vmem [shape: f32[2,4,96], index: 6, kind: input, shape index: {}]   ;;  %s4553_s7 = inlined_call_operand.hbm [shape: f32[32,128], index: 7, kind: input, shape index: {}]   ;;  %s4554_s8 = inlined_call_operand.vmem [shape: f32[1,128], index: 8, kind: input, shape index: {}]   ;;  %s4555_s9 = inlined_call_operand.hbm [shape: f32[2,1,128], index: 9, kind: output, shape index: {}]  }
   0x1   :  { %4569 = sst [smem:[#allocation18_spill]] %s4553_s7 }
   0x2   :  { %14 = vsyncpa [#allocation3], 0 }
   0x3   :  { %16 = vsyncpa [#allocation3 + $0x1], 0 }
   0x4   :  { %17 = vsyncpa [#allocation6], 0 }
   0x5   :  { %19 = vsyncpa [#allocation6 + $0x1], 0 }
   0x6   :  { %20 = vsyncpa [#allocation4], 0 }
   0x7   :  { %22 = vsyncpa [#allocation4 + $0x1], 0  ;;  %s3906_s30 = smov 0   ;;  %s3908_s10 = smov 0  }
   0x8   :  { %s3910_s11 = smov 0   ;;  %s3912_s12 = smov 0  }
   0x9 LB: > { %4570 = sst [smem:[#allocation13_spill]] %s3822_s30  ;;  %s3927_s13 = sadd.s32 4294967295, %s3834_s12   ;;  %s3834_s12 = sphi %s3912_s12, %s4596_s12   ;;  %s3830_s11 = sphi %s3910_s11, %s4598_s11   ;;  %s3826_s10 = sphi %s3908_s10, %s4600_s10   ;;  %s3822_s30 = sphi %s3906_s30, %s4599_s30  }
   0xa   : > { %4571 = sst [smem:[#allocation14_spill]] %s3830_s11  ;;  %s3121_s14 = sadd.s32 4294967294, %s3834_s12  }
   0xb   : > { %p48_p0 = scmp.ne.s32.totalorder %s3826_s10, %s3822_s30  ;;  %p4556_p1 = scmp.eq.s32.totalorder %s3927_s13, 0 }
   0xc   : > { %p251_p3 = scmp.eq.s32.totalorder %s3121_s14, 1  ;;  %p3122_p5 = scmp.ge.s32.totalorder %s3834_s12, 1 }
   0xd   : > { %p3936_p4 = por %p4556_p1, %p48_p0  ;;  %p258_p7 = scmp.lt.s32.totalorder %s3834_s12, 3 }
   0xe   : > { %p3941_p6 = por %p251_p3, %p48_p0  ;;  %s3836_s18 = smov [#allocation7]  }
   0xf   : > { %s4572_s15 = scalar_select %p3936_p4, 1, 0 }
  0x10   : > { %s4573_s16 = scalar_select %p3941_p6, 1, 0 }
  0x11   : > { %p3946_p8 = pnand %p3122_p5, %p258_p7  ;;  %s285_s19 = sshll.u32 %s3836_s18, 4  ;;  %s3950_s19 = int_to_ptr.vmem [resolvable:$true] %s285_s19 }
  0x12   : > { %4574 = sst [smem:[#allocation15_spill]] %s4573_s16  ;;  %s3962_s21 = sadd.s32 1, %s3834_s12  }
  0x13   : > { %s4575_s17 = scalar_select %p3946_p8, 1, 0 }
  0x14   : > { %p3564_p9 = pneg %p3946_p8  ;;  %4577 = sst [smem:[#allocation16_spill]] %s3962_s21 }
  0x15   : > { %s35_s22 = sadd.s32 1, %s3830_s11  ;;  %s32_s23 = ssub.s32 %s3834_s12, %s3962_s21 }
  0x16   : > { %p3957_p11 = pnand %p3564_p9, %p4556_p1  ;;  %s4578_s7 = sld [smem:[#allocation18_spill]] }
  0x18   : > { %p3674_p13 = pneg %p3957_p11 }
  0x1c   : > { %s3672_s26 = scalar_lea.hbm %s4578_s7, 512 }
  0x1d   : > { %p3673_p12 = scmp.ne.s32.totalorder %s4578_s7, %s3672_s26  ;;  %p3679_p5 = scmp.lt.u32.totalorder %s3672_s26, %s4578_s7 }
  0x1f   : > { %p3675_p0 = pnand %p3674_p13, %p3673_p12 }
  0x21   : > { %p3676_p3 = pneg %p3675_p0 }
  0x23   : > { %p3681_p7 = pnand %p3679_p5, %p3676_p3 }
  0x25   : > { %3684 = shalt.err (!%p3681_p7)
}
  0x26   : > { %s3685_s18 = scalar_lea.vmem %s3950_s19, 512  ;;  %p3693_p2 = scmp.lt.s32.totalorder %s3950_s19, %s3950_s19 }
  0x27   : > { %p3686_p9 = scmp.ne.s32.totalorder %s3950_s19, %s3685_s18  ;;  %p3694_p6 = scmp.lt.s32.totalorder %s3685_s18, %s3685_s18 }
  0x29   : > { %p3688_p10 = pnand %p3686_p9, %p3674_p13  ;;  %p3695_p4 = por %p3694_p6, %p3693_p2 }
  0x2b   : > { %p3689_p1 = pneg %p3688_p10 }
  0x2d   : > { %p3696_p8 = pnand %p3695_p4, %p3689_p1 }
  0x2f   : > { %3699 = shalt.err (!%p3696_p8)
}
  0x30   : > { %s3837_s24 = smov 128   ;;  %s3838_s25 = smov 8  }
  0x31   : > { %3567 = dma.hbm_to_vmem [thread:$0]  (!%p3957_p11), %s4578_s7, 512, %s3950_s19, [#allocation6], %s3837_s24, %s3837_s24, %s3838_s25  }
  0x32   : > { %p33_p2 = scmp.eq.s32.totalorder %s32_s23, 0  ;;  %p42_p1 = scmp.ne.s32.totalorder %s3830_s11, %s3826_s10 }
  0x33   : > { %p43_p4 = scmp.eq.s32.totalorder %s3834_s12, 0  ;;  %p3580_p6 = scmp.lt.s32.totalorder %s3834_s12, 2 }
  0x34   : > { %s3993_s28 = scalar_select %p33_p2, %s3830_s11, %s35_s22  }
  0x35   : > { %p44_p8 = por %p43_p4, %p42_p1  ;;  %p4580_p10 = scmp.eq.s32.totalorder %s3927_s13, 1 }
  0x36   : > { %4579 = sst [smem:[#allocation17_spill]] %s3993_s28  ;;  %s302_s14 = sand.u32 1, %s3830_s11  }
  0x37   : > { %p3997_p12 = por %p4580_p10, %p42_p1  ;;  %s3126_s18 = sshll.u32 %s3834_s12, 7 }
  0x38   : > { %s4003_s21 = sshll.u32 %s302_s14, 3  ;;  %s4008_s19 = scalar_lea.hbm %s4546_s0, %s3126_s18 }
  0x39   : > { %s4581_s29 = scalar_select %p3997_p12, 1, 0 }
  0x3a   : > { %s306_s22 = scalar_lea.vmem [#allocation2], %s4003_s21  ;;  %p4011_p11 = pnand %p3580_p6, %p44_p8 }
  0x3b   : > { %s313_s23 = sshll.u32 %s306_s22, 4  ;;  %s4020_s16 = scalar_lea.hbm %s4547_s1, %s3126_s18  ;;  %s4015_s23 = int_to_ptr.vmem [resolvable:$true] %s313_s23 }
  0x3c   : > { %s303_s27 = scalar_lea.sflag [#allocation3], %s302_s14  ;;  %s3700_s20 = scalar_lea.hbm %s4008_s19, 128 }
  0x3d   : > { %p3701_p13 = scmp.ne.s32.totalorder %s4008_s19, %s3700_s20  ;;  %p3702_p0 = pneg %p4011_p11 }
  0x3e   : > { %s3705_s28 = scalar_lea.hbm %s4546_s0, 256  ;;  %p3706_p7 = scmp.lt.u32.totalorder %s4008_s19, %s4546_s0 }
  0x3f   : > { %p3703_p3 = pnand %p3702_p0, %p3701_p13  ;;  %p3707_p9 = scmp.lt.u32.totalorder %s3705_s28, %s3700_s20 }
  0x40   : > { %p3709_p1 = scmp.lt.u32.totalorder %s3700_s20, %s4008_s19 }
  0x41   : > { %p3704_p5 = pneg %p3703_p3  ;;  %p3708_p2 = por %p3707_p9, %p3706_p7 }
  0x43   : > { %p3710_p4 = por %p3709_p1, %p3708_p2 }
  0x45   : > { %p3711_p6 = pnand %p3710_p4, %p3704_p5 }
  0x47   : > { %3714 = shalt.err (!%p3711_p6)
}
  0x48   : > { %s3715_s14 = scalar_lea.vmem %s4015_s23, 128  ;;  %s3839_s7 = smov [#allocation2]  }
  0x49   : > { %p3716_p8 = scmp.ne.s32.totalorder %s4015_s23, %s3715_s14  ;;  %s3720_s18 = sshll.u32 %s3839_s7, 4  ;;  %s3721_s18 = int_to_ptr.vmem [resolvable:$false] %s3720_s18 }
  0x4a   : > { %s3722_s30 = scalar_lea.vmem %s3721_s18, 256  ;;  %p3723_p3 = scmp.lt.s32.totalorder %s4015_s23, %s3721_s18 }
  0x4b   : > { %p3718_p10 = pnand %p3716_p8, %p3702_p0  ;;  %p3724_p7 = scmp.lt.s32.totalorder %s3722_s30, %s3715_s14 }
  0x4d   : > { %p3719_p13 = pneg %p3718_p10  ;;  %p3725_p9 = por %p3724_p7, %p3723_p3 }
  0x4f   : > { %p3726_p2 = pnand %p3725_p9, %p3719_p13 }
  0x51   : > { %3729 = shalt.err (!%p3726_p2)
}
  0x52   : > { %3571 = dma.hbm_to_vmem [thread:$0]  (!%p4011_p11), %s4008_s19, 128, %s4015_s23, %s303_s27  }
  0x53   : > { %s320_s11 = sand.u32 1, %s3834_s12   ;;  %s324_s28 = scalar_lea.vmem [#allocation5], %s4003_s21 }
  0x54   : > { %s331_s25 = sshll.u32 %s324_s28, 4  ;;  %s321_s26 = scalar_lea.sflag [#allocation6], %s320_s11  ;;  %s332_s25 = int_to_ptr.vmem [resolvable:$true] %s331_s25 }
  0x55   : > { %s3730_s20 = scalar_lea.hbm %s4020_s16, 128  ;;  %s3735_s7 = scalar_lea.hbm %s4547_s1, 256 }
  0x56   : > { %p3731_p5 = scmp.ne.s32.totalorder %s4020_s16, %s3730_s20  ;;  %p3736_p6 = scmp.lt.u32.totalorder %s4020_s16, %s4547_s1 }
  0x57   : > { %p3737_p8 = scmp.lt.u32.totalorder %s3735_s7, %s3730_s20  ;;  %p3739_p13 = scmp.lt.u32.totalorder %s3730_s20, %s4020_s16 }
  0x58   : > { %p3733_p1 = pnand %p3731_p5, %p3702_p0 }
  0x59   : > { %p3738_p10 = por %p3737_p8, %p3736_p6 }
  0x5a   : > { %p3734_p4 = pneg %p3733_p1 }
  0x5b   : > { %p3740_p3 = por %p3739_p13, %p3738_p10 }
  0x5d   : > { %p3741_p7 = pnand %p3740_p3, %p3734_p4 }
  0x5f   : > { %3744 = shalt.err (!%p3741_p7)
}
  0x60   : > { %s3745_s21 = scalar_lea.vmem %s332_s25, 128  ;;  %s3840_s19 = smov [#allocation5]  }
  0x61   : > { %p3746_p9 = scmp.ne.s32.totalorder %s332_s25, %s3745_s21  ;;  %s3750_s23 = sshll.u32 %s3840_s19, 4  ;;  %s3751_s23 = int_to_ptr.vmem [resolvable:$false] %s3750_s23 }
  0x62   : > { %s3752_s27 = scalar_lea.vmem %s3751_s23, 256  ;;  %p3753_p1 = scmp.lt.s32.totalorder %s332_s25, %s3751_s23 }
  0x63   : > { %p3748_p2 = pnand %p3746_p9, %p3702_p0  ;;  %p3754_p12 = scmp.lt.s32.totalorder %s3752_s27, %s3745_s21 }
  0x65   : > { %p3749_p5 = pneg %p3748_p2  ;;  %p3755_p6 = por %p3754_p12, %p3753_p1 }
  0x67   : > { %p3756_p8 = pnand %p3755_p6, %p3749_p5 }
  0x69   : > { %3759 = shalt.err (!%p3756_p8)
}
  0x6a   : > { %3574 = dma.hbm_to_vmem [thread:$0]  (!%p4011_p11), %s4020_s16, 128, %s332_s25, %s321_s26  }
  0x6b   : > { %p4583_p4 = scmp.ne.s32.totalorder %s4575_s17, 0 }
  0x6c   : > { %s4071_s11 = sand.u32 (!%p4583_p4), 1, %s3826_s10   ;;  %p4584_p0 = scmp.ne.s32.totalorder (!%p4583_p4), %s4572_s15, 0 }
  0x6d   : > { %340 = sbr.rel (%p4583_p4) target bundleno = 5502 (0x157e), region = 56  ;;  %s3130_s28 = sshll.u32 (!%p4583_p4), %s4071_s11, 3 }
  0x6e   : > { %s343_s20 = scalar_lea.sflag (!%p4583_p4), [#allocation3], %s4071_s11  ;;  %s346_s22 = scalar_lea.vmem (!%p4583_p4), [#allocation2], %s3130_s28 }
  0x74   : > { %3805 = dma.done.wait (%p4584_p0), %s343_s20, 128  }
  0x75   : > { %3807 = vsyncadd (%p4584_p0), %s343_s20, 4294967168  ;;  %s351_s24 = sand.u32 1, %s3927_s13   ;;  %s4080_s17 = scalar_lea.vmem [#allocation5], %s3130_s28 }
  0x76   : > { %s352_s16 = scalar_lea.sflag [#allocation6], %s351_s24 }
  0x77   : > { %3809 = dma.done.wait (%p4584_p0), %s352_s16, 128  }
  0x78   : > { %3811 = vsyncadd (%p4584_p0), %s352_s16, 4294967168  ;;  %p4585_p12 = scmp.eq.s32.totalorder %s3927_s13, 0 }
  0x7a   : > { %3813 = dma.done.wait (%p4585_p12), [#allocation6], 512   ;;  %p4586_p11 = pmov %p4585_p12 }
  0x7b   : > { %v3841_v0 = vmov 0.0|0.0   ;;  %vm3842_vm0 = vmmov 0   ;;  %v3843_v1 = vmov 0.0   ;;  %v400_v2 = vld [vmem:[%s4548_s2] sm:$0xff]  ;;  %v401_v3 = vld [vmem:[%s4548_s2 + $0x8] sm:$0xff]  ;;  %v402_v4 = vld [vmem:[%s4548_s2 + $0x10] sm:$0xff]  ;;  %v421_v9 = vlaneseq }
  0x7c   : > { %3815 = vsyncadd (%p4586_p11), [#allocation6], 4294966784  ;;  %3500 = vmatprep.subr.bf16.mxu0 %v3841_v0  ;;  %3295 = vmatprep.mubr.msk.f32.mxu0 %vm3842_vm0, %v3843_v1  ;;  %v3501_v5 = vpack.c.bf16 %v401_v3, %v400_v2  ;;  %v403_v6 = vld [vmem:[%s4548_s2 + $0x18] sm:$0xff]  ;;  %v4109_v8 = vld [vmem:[%s346_s22] sm:$0xff]  ;;  %vm425_vm1 = vcmask 261120   ;;  %s3844_s27 = smov 120  }
  0x7d   : > { %3298 = vmatprep.subr.mxu1 %v3843_v1  ;;  %3300 = vmatprep.mubr.msk.f32.mxu1 %vm3842_vm0, %v3843_v1  ;;  %v3504_v7 = vpack.c.bf16 %v403_v6, %v402_v4  ;;  %v4116_v10 = vshrl.u32 %v421_v9, 7  ;;  %v4122_v12 = vld [vmem:[%s4552_s6] sm:$0xf]  ;;  %s3845_s28 = smov 96   ;;  %s3846_s20 = smov 80   ;;  %vm502_vm2 = vcmask 64512  }
  0x7e   : > { %3502 = vmatpush3.bf16.msra.mxu0 %v3501_v5  ;;  %s3847_s22 = smov 88   ;;  %s4568_s24 = smov 72   ;;  %v4165_v26 = vld [vmem:[%s4080_s17] sm:$0xff]  ;;  %v404_v9 = vld [vmem:[%s4549_s3] sm:$0xff]  ;;  %vm1568_vm3 = vcmask 523264  }
  0x7f   : > { %3503 = vmatprep.subr.bf16.mxu0 %v3841_v0  ;;  %v423_v11 = vsub.s32 0, %v4116_v10  ;;  %s3849_s16 = smov 112   ;;  %s3850_s15 = smov 104  }
  0x80   : > { %s4567_s17 = smov 56   ;;  %s3852_s25 = smov 64  }
  0x81   : > { %v424_v13 = vrot.slane %v4122_v12, %v423_v11  ;;  %s4566_s26 = smov 48   ;;  %s4565_s14 = smov 40  }
  0x82   : > { %3505 = vmatpush3.bf16.msra.mxu0 %v3504_v7  ;;  %v405_v7 = vld [vmem:[%s4549_s3 + $0x8] sm:$0xff]  ;;  %s4587_s7 = smov 72   ;;  %p4591_p13 = scmp.ne.s32.totalorder %s4581_s29, 0 }
  0x83   : > { %3308 = vmatprep.subr.mxu0 %v3843_v1 }
  0x85   : > { %3296 = vmatmul.mubr.msk.f32.vlgmr.msra.gmra.mrb[0].mxu0 %vm425_vm1, %v4109_v8 }
  0x86   : > { %3310 = vmatprep.mubr.msk.f32.mxu0 %vm3842_vm0, %v3843_v1 }
 0x158   : > { %v495_v14 = vpop.f32.mrb[0].mxu0 }
 0x159   : > { %v4127_v15 = vadd.f32 %v495_v14, %v424_v13  ;;  %v3297_v16 = vpop.f32.mrb[1].mxu0 }
 0x15b   : > { %577 = vrot.lane.b32.xlu1 %v4127_v15, %s3844_s27  ;;  %500 = vrot.lane.b32.xlu0 %v4127_v15, %s3845_s28 }
 0x15f   : > { %657 = vrot.lane.b32.xlu1 %v4127_v15, %s3846_s20  ;;  %579 = vrot.lane.b32.xlu0 %v4127_v15, %s3847_s22 }
 0x163   : > { %735 = vrot.lane.b32.xlu1 %v4127_v15, %s4568_s24  ;;  %655 = vrot.lane.b32.xlu0 %v4127_v15, %s3849_s16 }
 0x167   : > { %733 = vrot.lane.b32.xlu0 %v4127_v15, %s3850_s15 }
 0x1cd   : > { %v578_v17 = vpop.permute.xlu1 %577  ;;  %v501_v18 = vpop.permute.xlu0 %500 }
 0x1ce   : > { %3299 = vmatpush3.xpose.msk.msra.mxu1 %vm502_vm2, %v501_v18 }
 0x1cf   : > { %3303 = vmatprep.subr.mxu1 %v3843_v1 }
 0x1d1   : > { %v658_v19 = vpop.permute.xlu1 %657  ;;  %3301 = vmatmul.mubr.msk.f32.vlgmr.msra.gmra.mrb[0].mxu1 %vm502_vm2, %v4127_v15  ;;  %v580_v20 = vpop.permute.xlu0 %579 }
 0x1d2   : > { %3304 = vmatpush3.xpose.msk.msra.mxu1 %vm502_vm2, %v580_v20  ;;  %3309 = vmatpush3.xpose.msk.msra.mxu0 %vm502_vm2, %v658_v19 }
 0x1d3   : > { %3305 = vmatprep.mubr.msk.f32.mxu1 %vm3842_vm0, %v3843_v1  ;;  %3313 = vmatprep.subr.mxu1 %v3843_v1 }
 0x1d4   : > { %3318 = vmatprep.subr.mxu0 %v3843_v1 }
 0x1d5   : > { %v736_v21 = vpop.permute.xlu1 %735  ;;  %3306 = vmatmul.mubr.msk.f32.vlgmr.msra.gmra.mrb[2].mxu1 %vm502_vm2, %v578_v17  ;;  %v656_v22 = vpop.permute.xlu0 %655 }
 0x1d6   : > { %3311 = vmatmul.mubr.msk.f32.vlgmr.msra.gmra.mrb[2].mxu0 %vm502_vm2, %v656_v22  ;;  %3314 = vmatpush3.xpose.msk.msra.mxu1 %vm502_vm2, %v736_v21 }
 0x1d7   : > { %3315 = vmatprep.mubr.msk.f32.mxu1 %vm3842_vm0, %v3843_v1  ;;  %3323 = vmatprep.subr.mxu1 %v3843_v1 }
 0x1d8   : > { %3320 = vmatprep.mubr.msk.f32.mxu0 %vm3842_vm0, %v3843_v1 }
 0x1d9   : > { %v734_v23 = vpop.permute.xlu0 %733 }
 0x1da   : > { %3316 = vmatmul.mubr.msk.f32.vlgmr.msra.gmra.mrb[4].mxu1 %vm502_vm2, %v734_v23 }
 0x1db   : > { %3325 = vmatprep.mubr.msk.f32.mxu1 %vm3842_vm0, %v3843_v1 }
 0x2a4   : > { %v573_v24 = vpop.f32.mrb[0].mxu1 }
 0x2a5   : > { %v3302_v25 = vpop.f32.mrb[1].mxu1  ;;  %v811_v32 = vadd.f32 %v573_v24, %v4165_v26 }
 0x2a6   : > { %v406_v25 = vld [vmem:[%s4549_s3 + $0x10] sm:$0xff] }
 0x2a7   : > { %v815_v37 = vsel %vm502_vm2, %v811_v32, -inf }
 0x2a8   : > { %v651_v27 = vpop.f32.mrb[2].mxu1 }
 0x2a9   : > { %v812_v28 = vadd.f32 %v651_v27, %v4165_v26  ;;  %v3307_v29 = vpop.f32.mrb[3].mxu1  ;;  %v729_v30 = vpop.f32.mrb[2].mxu0 }
 0x2aa   : > { %v3312_v31 = vpop.f32.mrb[3].mxu0  ;;  %v813_v36 = vadd.f32 %v729_v30, %v4165_v26  ;;  %v407_v29 = vld [vmem:[%s4549_s3 + $0x18] sm:$0xff] }
 0x2ab   : > { %v818_v33 = vsel %vm502_vm2, %v812_v28, -inf }
 0x2ac   : > { %819 = vmax.xlane.f32.xlu1 %v818_v33  ;;  %v821_v39 = vsel %vm502_vm2, %v813_v36, -inf }
 0x2ad   : > { %v807_v34 = vpop.f32.mrb[4].mxu1 }
 0x2ae   : > { %v3317_v35 = vpop.f32.mrb[5].mxu1  ;;  %v814_v38 = vadd.f32 %v807_v34, %v4165_v26 }
 0x2b0   : > { %816 = vmax.xlane.f32.xlu1 %v815_v37  ;;  %v824_v40 = vsel %vm502_vm2, %v814_v38, -inf  ;;  %v1459_v37 = vsub.s32 1, %v4116_v10 }
 0x2b4   : > { %822 = vmax.xlane.f32.xlu1 %v821_v39 }
 0x2b8   : > { %825 = vmax.xlane.f32.xlu1 %v824_v40 }
 0x339   : > { %v820_v41 = vpop.xlane.xlu1 %819 }
 0x33a   : > { %v828_v42 = vsub.f32 %v812_v28, %v820_v41  ;;  %v1460_v41 = vrot.slane %v4122_v12, %v1459_v37 }
 0x33c   : > { %v833_v43 = vmul.f32 1.442695, %v828_v42 }
 0x33d   : > { %v817_v44 = vpop.xlane.xlu1 %816 }
 0x33e   : > { %3632 = vpow2.f32 %v833_v43  ;;  %v827_v45 = vsub.f32 %v811_v32, %v817_v44 }
 0x340   : > { %v831_v46 = vmul.f32 1.442695, %v827_v45 }
 0x341   : > { %v823_v47 = vpop.xlane.xlu1 %822 }
 0x342   : > { %3634 = vpow2.f32 %v831_v46  ;;  %v829_v48 = vsub.f32 %v813_v36, %v823_v47 }
 0x344   : > { %v835_v49 = vmul.f32 1.442695, %v829_v48 }
 0x345   : > { %v826_v50 = vpop.xlane.xlu1 %825 }
 0x346   : > { %3636 = vpow2.f32 %v835_v49  ;;  %v830_v51 = vsub.f32 %v814_v38, %v826_v50 }
 0x348   : > { %v3633_v52 = vpop.eup %3632  ;;  %v837_v53 = vmul.f32 1.442695, %v830_v51 }
 0x349   : > { %v842_v54 = vsel %vm502_vm2, %v3633_v52, 0.0 }
 0x34a   : > { %3638 = vpow2.f32 %v837_v53  ;;  %843 = vadd.xlane.f32.xlu0 %v842_v54  ;;  %v408_v53 = vld [vmem:[%s4550_s4] sm:$0xff] }
 0x34c   : > { %v3635_v55 = vpop.eup %3634 }
 0x34d   : > { %v839_v56 = vsel %vm502_vm2, %v3635_v55, 0.0 }
 0x34e   : > { %840 = vadd.xlane.f32.xlu1 %v839_v56  ;;  %v411_v56 = vld [vmem:[%s4550_s4 + $0x18] sm:$0xff] }
 0x350   : > { %v3637_v57 = vpop.eup %3636 }
 0x351   : > { %v845_v58 = vsel %vm502_vm2, %v3637_v57, 0.0 }
 0x352   : > { %846 = vadd.xlane.f32.xlu1 %v845_v58  ;;  %v412_v58 = vld [vmem:[%s4551_s5] sm:$0xff] }
 0x354   : > { %v3639_v59 = vpop.eup %3638 }
 0x355   : > { %v848_v60 = vsel %vm502_vm2, %v3639_v59, 0.0 }
 0x356   : > { %849 = vadd.xlane.f32.xlu1 %v848_v60  ;;  %v414_v60 = vld [vmem:[%s4551_s5 + $0x10] sm:$0xff] }
 0x360   : > { %935 = vrot.lane.b32.xlu0 %v4127_v15, %s4567_s17  ;;  %s3011_s17 = scalar_lea.sflag [#allocation4], %s4071_s11 }
 0x364   : > { %859 = vrot.lane.b32.xlu0 %v4127_v15, %s3852_s25 }
 0x367   : > { %1157 = vrot.lane.b32.xlu1 %v4127_v15, %s4566_s26  ;;  %s3193_s26 = sshll.u32 %s3927_s13, 4  ;;  %s3855_s13 = smov [#allocation8]  }
 0x368   : > { %1307 = vrot.lane.b32.xlu0 %v4127_v15, %s4565_s14  ;;  %s397_s14 = scalar_lea.vmem [#allocation8], %s4071_s11  ;;  %s4502_s24 = scalar_lea.hbm %s4555_s9, %s3193_s26 }
 0x369   : > { %s3023_s18 = sshll.u32 %s397_s14, 4  ;;  %s3764_s23 = sshll.u32 %s3855_s13, 4  ;;  %s4504_s18 = int_to_ptr.vmem [resolvable:$true] %s3023_s18  ;;  %s3765_s23 = int_to_ptr.vmem [resolvable:$false] %s3764_s23 }
 0x36a   : > { %s3760_s19 = scalar_lea.vmem %s4504_s18, 16  ;;  %p3767_p9 = scmp.lt.s32.totalorder %s4504_s18, %s3765_s23 }
 0x36b   : > { %p3761_p10 = scmp.ne.s32.totalorder %s4504_s18, %s3760_s19 }
 0x36d   : > { %p3762_p3 = pnand %p3761_p10, %p4591_p13 }
 0x36f   : > { %p3763_p7 = pneg %p3762_p3 }
 0x3d7   : > { %v844_v61 = vpop.xlane.xlu0 %843 }
 0x3d8   : > { %3640 = vrcp.f32 %v844_v61 }
 0x3db   : > { %v936_v62 = vpop.permute.xlu0 %935  ;;  %v841_v63 = vpop.xlane.xlu1 %840 }
 0x3dc   : > { %3642 = vrcp.f32 %v841_v63  ;;  %3324 = vmatpush3.msra.mxu1 %v936_v62  ;;  %v415_v62 = vld [vmem:[%s4551_s5 + $0x18] sm:$0xff] }
 0x3dd   : > { %3333 = vmatprep.subr.mxu1 %v3843_v1  ;;  %v3516_v63 = vpack.c.bf16 %v415_v62, %v414_v60 }
 0x3df   : > { %v860_v2 = vpop.permute.xlu0 %859  ;;  %v847_v13 = vpop.xlane.xlu1 %846 }
 0x3e0   : > { %3319 = vmatpush3.msra.mxu0 %v860_v2  ;;  %3644 = vrcp.f32 %v847_v13  ;;  %v416_v2 = vld [vmem:[%s4551_s5 + $0x20] sm:$0xff] }
 0x3e1   : > { %3328 = vmatprep.subr.mxu0 %v3843_v1 }
 0x3e2   : > { %v3641_v3 = vpop.eup %3640 }
 0x3e3   : > { %v856_v4 = vmul.f32 %v3641_v3, %v3633_v52  ;;  %v850_v14 = vpop.xlane.xlu1 %849  ;;  %v1308_v22 = vpop.permute.xlu0 %1307  ;;  %v417_v3 = vld [vmem:[%s4551_s5 + $0x28] sm:$0xff] }
 0x3e4   : > { %3646 = vrcp.f32 %v850_v14 }
 0x3e5   : > { %3326 = vmatmul.mubr.msk.f32.vlgmr.msra.gmra.mrb[6].mxu1 %vm502_vm2, %v856_v4  ;;  %v3519_v4 = vpack.c.bf16 %v417_v3, %v416_v2 }
 0x3e6   : > { %v3643_v5 = vpop.eup %3642  ;;  %3335 = vmatprep.mubr.msk.f32.mxu1 %vm3842_vm0, %v3843_v1  ;;  %3334 = vmatpush3.msra.mxu1 %v404_v9 }
 0x3e7   : > { %v855_v6 = vmul.f32 %v3643_v5, %v3635_v55  ;;  %3343 = vmatprep.subr.mxu1 %v3843_v1  ;;  %v1158_v17 = vpop.permute.xlu1 %1157  ;;  %v410_v55 = vld [vmem:[%s4550_s4 + $0x10] sm:$0xff] }
 0x3e9   : > { %3321 = vmatmul.mubr.msk.f32.vlgmr.msra.gmra.mrb[4].mxu0 %vm502_vm2, %v855_v6 }
 0x3ea   : > { %3329 = vmatpush3.msra.mxu0 %v405_v7  ;;  %3330 = vmatprep.mubr.msk.f32.mxu0 %vm3842_vm0, %v3843_v1  ;;  %v3645_v15 = vpop.eup %3644 }
 0x3eb   : > { %3338 = vmatprep.subr.mxu0 %v3843_v1  ;;  %v857_v19 = vmul.f32 %v3645_v15, %v3637_v57  ;;  %v3510_v57 = vpack.c.bf16 %v411_v56, %v410_v55 }
 0x3ee   : > { %v3647_v20 = vpop.eup %3646 }
 0x3ef   : > { %v858_v24 = vmul.f32 %v3647_v20, %v3639_v59  ;;  %v413_v59 = vld [vmem:[%s4551_s5 + $0x8] sm:$0xff] }
 0x3f0   : > { %v3513_v61 = vpack.c.bf16 %v413_v59, %v412_v58 }
 0x4b8   : > { %v1007_v16 = vpop.f32.mrb[6].mxu1 }
 0x4b9   : > { %v3327_v18 = vpop.f32.mrb[7].mxu1  ;;  %3331 = vmatmul.mubr.msk.f32.vlgmr.msra.gmra.mrb[6].mxu0 %vm502_vm2, %v1007_v16 }
 0x4ba   : > { %3339 = vmatpush3.msra.mxu0 %v1158_v17  ;;  %3340 = vmatprep.mubr.msk.f32.mxu0 %vm3842_vm0, %v3843_v1  ;;  %v418_v18 = vld [vmem:[%s4551_s5 + $0x30] sm:$0xff] }
 0x4bb   : > { %3348 = vmatprep.subr.mxu0 %v3843_v1 }
 0x4bc   : > { %v931_v21 = vpop.f32.mrb[4].mxu0 }
 0x4bd   : > { %v3322_v23 = vpop.f32.mrb[5].mxu0  ;;  %3336 = vmatmul.mubr.msk.f32.vlgmr.msra.gmra.mrb[8].mxu1 %vm502_vm2, %v931_v21  ;;  %3341 = vmatmul.mubr.msk.f32.vlgmr.msra.gmra.mrb[8].mxu0 %vm502_vm2, %v857_v19  ;;  %v419_v19 = vld [vmem:[%s4551_s5 + $0x38] sm:$0xff]  ;;  %v1488_v21 = vsub.s32 3, %v4116_v10 }
 0x4be   : > { %3349 = vmatpush3.msra.mxu0 %v1308_v22  ;;  %3350 = vmatprep.mubr.msk.f32.mxu0 %vm3842_vm0, %v3843_v1  ;;  %v3522_v20 = vpack.c.bf16 %v419_v19, %v418_v18 }
 0x4bf   : > { %3345 = vmatprep.mubr.msk.f32.mxu1 %vm3842_vm0, %v3843_v1  ;;  %3506 = vmatprep.subr.bf16.mxu0 %v3841_v0  ;;  %v1489_v22 = vrot.slane %v4122_v12, %v1488_v21 }
 0x4c0   : > { %3344 = vmatpush3.msra.mxu1 %v406_v25 }
 0x4c1   : > { %3351 = vmatmul.mubr.msk.f32.vlgmr.msra.gmra.mrb[10].mxu0 %vm502_vm2, %v858_v24  ;;  %3353 = vmatprep.subr.mxu1 %v3843_v1 }
 0x4c2   : > { %3366 = vmatprep.mubr.msk.f32.mxu0 %vm3842_vm0, %v3843_v1 }
 0x58c   : > { %v1080_v27 = vpop.f32.mrb[6].mxu0 }
 0x58d   : > { %v3332_v28 = vpop.f32.mrb[7].mxu0 }
 0x58e   : > { %v1566_v28 = vsub.s32 2, %v4116_v10 }
 0x590   : > { %v1153_v30 = vpop.f32.mrb[8].mxu1  ;;  %v1229_v31 = vpop.f32.mrb[8].mxu0 }
 0x591   : > { %v1154_v32 = vadd.f32 %v1153_v30, %v1080_v27  ;;  %v3337_v33 = vpop.f32.mrb[9].mxu1  ;;  %v3342_v34 = vpop.f32.mrb[9].mxu0  ;;  %3346 = vmatmul.mubr.msk.f32.vlgmr.msra.gmra.mrb[10].mxu1 %vm502_vm2, %v1229_v31 }
 0x592   : > { %3354 = vmatpush3.msra.mxu1 %v407_v29  ;;  %3355 = vmatprep.mubr.msk.f32.mxu1 %vm3842_vm0, %v3843_v1  ;;  %v1567_v29 = vrot.slane %v4122_v12, %v1566_v28  ;;  %v3152_v12 = vld [vmem:[%s4548_s2 + $0x20] sm:$0xff] }
 0x593   : > { %3512 = vmatprep.subr.bf16.mxu1 %v3841_v0 }
 0x594   : > { %v1379_v35 = vpop.f32.mrb[10].mxu0 }
 0x595   : > { %v3352_v36 = vpop.f32.mrb[11].mxu0  ;;  %3356 = vmatmul.mubr.msk.f32.vlgmr.msra.gmra.mrb[12].mxu1 %vm502_vm2, %v1379_v35 }
 0x596   : > { %3385 = vmatprep.mubr.msk.f32.mxu1 %vm3842_vm0, %v3843_v1  ;;  %3514 = vmatpush3.bf16.msra.mxu1 %v3513_v61 }
 0x597   : > { %3515 = vmatprep.subr.bf16.mxu1 %v3841_v0 }
 0x59a   : > { %3517 = vmatpush3.bf16.msra.mxu1 %v3516_v63 }
 0x59b   : > { %3518 = vmatprep.subr.bf16.mxu1 %v3841_v0 }
 0x59e   : > { %3520 = vmatpush3.bf16.msra.mxu1 %v3519_v4 }
 0x59f   : > { %3521 = vmatprep.subr.bf16.mxu1 %v3841_v0 }
 0x5a2   : > { %3523 = vmatpush3.bf16.msra.mxu1 %v3522_v20 }
 0x5a3   : > { %3404 = vmatprep.subr.mxu1 %v3843_v1 }
 0x664   : > { %v1302_v38 = vpop.f32.mrb[10].mxu1 }
 0x665   : > { %v1306_v39 = vadd.f32 %v1302_v38, %v1154_v32  ;;  %v3347_v40 = vpop.f32.mrb[11].mxu1 }
 0x668   : > { %v1452_v42 = vpop.f32.mrb[12].mxu1 }
 0x669   : > { %v1456_v43 = vadd.f32 %v1452_v42, %v1306_v39  ;;  %v3357_v44 = vpop.f32.mrb[13].mxu1 }
 0x66a   : > { %v3155_v44 = vld [vmem:[%s4548_s2 + $0x38] sm:$0xff] }
 0x66b   : > { %v1461_v45 = vadd.f32 %v1460_v41, %v1456_v43  ;;  %v3154_v43 = vld [vmem:[%s4548_s2 + $0x30] sm:$0xff] }
 0x66d   : > { %v1462_v46 = vadd.f32 %v1461_v45, %v4109_v8  ;;  %v409_v8 = vld [vmem:[%s4550_s4 + $0x8] sm:$0xff]  ;;  %v3528_v45 = vpack.c.bf16 %v3155_v44, %v3154_v43 }
 0x66e   : > { %v3507_v54 = vpack.c.bf16 %v409_v8, %v408_v53 }
 0x66f   : > { %v1463_v47 = vsel %vm425_vm1, %v1462_v46, 0.0 }
 0x670   : > { %1464 = vadd.xlane.f32.xlu0 %v1463_v47  ;;  %3508 = vmatpush3.bf16.msra.mxu0 %v3507_v54  ;;  %v4323_v54 = vld [vmem:[%s4552_s6 + $0x4] sm:$0xf] }
 0x671   : > { %3509 = vmatprep.subr.bf16.mxu0 %v3841_v0  ;;  %v1694_v55 = vrot.slane %v4323_v54, %v423_v11 }
 0x674   : > { %3511 = vmatpush3.bf16.msra.mxu0 %v3510_v57 }
 0x675   : > { %3524 = vmatprep.subr.bf16.mxu0 %v3841_v0 }
 0x686   : > { %1478 = vrot.lane.b32.xlu0 %v1460_v41, %s3845_s28 }
 0x6fd   : > { %v1465_v48 = vpop.xlane.xlu0 %1464 }
 0x6fe   : > { %v1467_v49 = vmul.f32 0.03125, %v1465_v48 }
 0x700   : > { %v1468_v50 = vsub.f32 %v1462_v46, %v1467_v49 }
 0x701   : > { %v1479_v13 = vpop.permute.xlu0 %1478 }
 0x702   : > { %v1469_v51 = vmul.f32 %v1468_v50, %v1468_v50 }
 0x704   : > { %v1470_v52 = vsel %vm425_vm1, %v1469_v51, 0.0 }
 0x705   : > { %1471 = vadd.xlane.f32.xlu1 %v1470_v52 }
 0x716   : > { %1482 = vrot.lane.b32.xlu1 %v1460_v41, %s3852_s25  ;;  %v3153_v41 = vld [vmem:[%s4548_s2 + $0x28] sm:$0xff] }
 0x717   : > { %v3525_v42 = vpack.c.bf16 %v3153_v41, %v3152_v12 }
 0x792   : > { %v1472_v5 = vpop.xlane.xlu1 %1471 }
 0x793   : > { %v1473_v6 = vmul.f32 0.03125, %v1472_v5 }
 0x795   : > { %v1474_v7 = vadd.f32 1e-05, %v1473_v6 }
 0x796   : > { %v1483_v15 = vpop.permute.xlu1 %1482 }
 0x797   : > { %3648 = vrsqrt.f32 %v1474_v7 }
 0x7a1   : > { %v3649_v9 = vpop.eup %3648 }
 0x7a2   : > { %v1476_v14 = vmul.f32 %v3649_v9, %v1468_v50 }
 0x7a4   : > { %v1481_v16 = vmul.f32 %v1479_v13, %v1476_v14 }
 0x7a6   : > { %v1485_v17 = vadd.f32 %v1483_v15, %v1481_v16 }
 0x7a8   : > { %3367 = vmatmul.mubr.msk.f32.vlgmr.msra.gmra.mrb[12].mxu0 %vm425_vm1, %v1485_v17 }
 0x7a9   : > { %3396 = vmatprep.mubr.msk.f32.mxu0 %vm3842_vm0, %v3843_v1  ;;  %3526 = vmatpush3.bf16.msra.mxu0 %v3525_v42 }
 0x7aa   : > { %3527 = vmatprep.subr.bf16.mxu0 %v3841_v0 }
 0x7ad   : > { %3529 = vmatpush3.bf16.msra.mxu0 %v3528_v45 }
 0x7ae   : > { %3399 = vmatprep.subr.mxu0 %v3843_v1 }
 0x87b   : > { %v1559_v23 = vpop.f32.mrb[12].mxu0 }
 0x87c   : > { %v1560_v24 = vadd.f32 %v1559_v23, %v1489_v22  ;;  %v3368_v25 = vpop.f32.mrb[13].mxu0 }
 0x87e   : > { %v1563_v27 = vmax.f32 %v1560_v24, 0.0 }
 0x880   : > { %3386 = vmatmul.mubr.msk.f32.vlgmr.msra.gmra.mrb[14].mxu1 %vm1568_vm3, %v1563_v27 }
 0x881   : > { %3406 = vmatprep.mubr.msk.f32.mxu1 %vm3842_vm0, %v3843_v1 }
 0x953   : > { %v1638_v30 = vpop.f32.mrb[14].mxu1 }
 0x954   : > { %v1639_v31 = vadd.f32 %v1638_v30, %v1567_v29  ;;  %v3387_v32 = vpop.f32.mrb[15].mxu1 }
 0x956   : > { %v1642_v33 = vadd.f32 %v1639_v31, %v1485_v17 }
 0x958   : > { %v1643_v34 = vsel %vm425_vm1, %v1642_v33, 0.0 }
 0x959   : > { %1644 = vadd.xlane.f32.xlu0 %v1643_v34 }
 0x96f   : > { %1657 = vrot.lane.b32.xlu0 %v1567_v29, %s3845_s28 }
 0x9e6   : > { %v1645_v35 = vpop.xlane.xlu0 %1644 }
 0x9e7   : > { %v1646_v36 = vmul.f32 0.03125, %v1645_v35 }
 0x9e9   : > { %v1647_v38 = vsub.f32 %v1642_v33, %v1646_v36 }
 0x9ea   : > { %v1658_v50 = vpop.permute.xlu0 %1657 }
 0x9eb   : > { %v1648_v39 = vmul.f32 %v1647_v38, %v1647_v38 }
 0x9ed   : > { %v1649_v40 = vsel %vm425_vm1, %v1648_v39, 0.0 }
 0x9ee   : > { %1650 = vadd.xlane.f32.xlu1 %v1649_v40 }
 0x9ff   : > { %1661 = vrot.lane.b32.xlu1 %v1567_v29, %s3852_s25 }
 0xa7b   : > { %v1651_v46 = vpop.xlane.xlu1 %1650 }
 0xa7c   : > { %v1652_v47 = vmul.f32 0.03125, %v1651_v46 }
 0xa7e   : > { %v1653_v48 = vadd.f32 1e-05, %v1652_v47 }
 0xa7f   : > { %v1662_v52 = vpop.permute.xlu1 %1661 }
 0xa80   : > { %3650 = vrsqrt.f32 %v1653_v48 }
 0xa8a   : > { %v3651_v49 = vpop.eup %3650 }
 0xa8b   : > { %v1655_v51 = vmul.f32 %v3651_v49, %v1647_v38 }
 0xa8d   : > { %v1660_v53 = vmul.f32 %v1658_v50, %v1655_v51 }
 0xa8f   : > { %v4314_v8 = vadd.f32 %v1662_v52, %v1660_v53 }
 0xa91   : > { %3397 = vmatmul.mubr.msk.f32.vlgmr.msra.gmra.mrb[14].mxu0 %vm425_vm1, %v4314_v8 }
 0xa92   : > { %3401 = vmatprep.mubr.msk.f32.mxu0 %vm3842_vm0, %v3843_v1 }
 0xb64   : > { %v1764_v56 = vpop.f32.mrb[14].mxu0 }
 0xb65   : > { %v4328_v57 = vadd.f32 %v1764_v56, %v1694_v55  ;;  %v3398_v58 = vpop.f32.mrb[15].mxu0  ;;  %v3157_v55 = vld [vmem:[%s4549_s3 + $0x28] sm:$0xff] }
 0xb67   : > { %1923 = vrot.lane.b32.xlu1 %v4328_v57, %s3849_s16  ;;  %1847 = vrot.lane.b32.xlu0 %v4328_v57, %s3847_s22  ;;  %s4590_s22 = smov 40  }
 0xb6b   : > { %2001 = vrot.lane.b32.xlu1 %v4328_v57, %s3850_s15  ;;  %1845 = vrot.lane.b32.xlu0 %v4328_v57, %s3844_s27  ;;  %s4588_s27 = smov 56  }
 0xb6f   : > { %1769 = vrot.lane.b32.xlu0 %v4328_v57, %s3845_s28 }
 0xb73   : > { %1925 = vrot.lane.b32.xlu0 %v4328_v57, %s3846_s20  ;;  %s4589_s20 = smov 48  }
 0xb77   : > { %2003 = vrot.lane.b32.xlu0 %v4328_v57, %s4587_s7  ;;  %s3766_s7 = scalar_lea.vmem %s3765_s23, 32 }
 0xb78   : > { %p3768_p2 = scmp.lt.s32.totalorder %s3766_s7, %s3760_s19 }
 0xb7a   : > { %p3769_p5 = por %p3768_p2, %p3767_p9 }
 0xb7c   : > { %p3770_p1 = pnand %p3769_p5, %p3763_p7 }
 0xbd9   : > { %v1848_v11 = vpop.permute.xlu0 %1847  ;;  %v1924_v62 = vpop.permute.xlu1 %1923 }
 0xbda   : > { %3405 = vmatpush3.xpose.msk.msra.mxu1 %vm502_vm2, %v1848_v11 }
 0xbdb   : > { %3414 = vmatprep.subr.mxu1 %v3843_v1 }
 0xbdd   : > { %v1846_v59 = vpop.permute.xlu0 %1845  ;;  %v2002_v2 = vpop.permute.xlu1 %2001 }
 0xbde   : > { %3407 = vmatmul.mubr.msk.f32.vlgmr.msra.gmra.mrb[16].mxu1 %vm502_vm2, %v1846_v59 }
 0xbdf   : > { %3416 = vmatprep.mubr.msk.f32.mxu1 %vm3842_vm0, %v3843_v1 }
 0xbe1   : > { %v1770_v60 = vpop.permute.xlu0 %1769 }
 0xbe2   : > { %3400 = vmatpush3.xpose.msk.msra.mxu0 %vm502_vm2, %v1770_v60 }
 0xbe3   : > { %3409 = vmatprep.subr.mxu0 %v3843_v1 }
 0xbe5   : > { %3402 = vmatmul.mubr.msk.f32.vlgmr.msra.gmra.mrb[16].mxu0 %vm502_vm2, %v4328_v57  ;;  %v1926_v61 = vpop.permute.xlu0 %1925 }
 0xbe6   : > { %3410 = vmatpush3.xpose.msk.msra.mxu0 %vm502_vm2, %v1926_v61  ;;  %3411 = vmatprep.mubr.msk.f32.mxu0 %vm3842_vm0, %v3843_v1 }
 0xbe7   : > { %3419 = vmatprep.subr.mxu0 %v3843_v1 }
 0xbe9   : > { %3412 = vmatmul.mubr.msk.f32.vlgmr.msra.gmra.mrb[18].mxu0 %vm502_vm2, %v1924_v62  ;;  %v2004_v63 = vpop.permute.xlu0 %2003 }
 0xbea   : > { %3415 = vmatpush3.xpose.msk.msra.mxu1 %vm502_vm2, %v2004_v63  ;;  %3421 = vmatprep.mubr.msk.f32.mxu0 %vm3842_vm0, %v3843_v1 }
 0xbeb   : > { %3424 = vmatprep.subr.mxu1 %v3843_v1 }
 0xbed   : > { %3417 = vmatmul.mubr.msk.f32.vlgmr.msra.gmra.mrb[18].mxu1 %vm502_vm2, %v2002_v2  ;;  %v3156_v2 = vld [vmem:[%s4549_s3 + $0x20] sm:$0xff] }
 0xbee   : > { %3426 = vmatprep.mubr.msk.f32.mxu1 %vm3842_vm0, %v3843_v1 }
 0xcb1   : > { %v1919_v3 = vpop.f32.mrb[16].mxu1 }
 0xcb2   : > { %v2080_v4 = vadd.f32 %v1919_v3, %v4165_v26  ;;  %v3408_v5 = vpop.f32.mrb[17].mxu1  ;;  %v3158_v3 = vld [vmem:[%s4549_s3 + $0x30] sm:$0xff] }
 0xcb4   : > { %v2086_v6 = vsel %vm502_vm2, %v2080_v4, -inf }
 0xcb5   : > { %2087 = vmax.xlane.f32.xlu0 %v2086_v6 }
 0xcb8   : > { %v1841_v7 = vpop.f32.mrb[16].mxu0 }
 0xcb9   : > { %v3403_v9 = vpop.f32.mrb[17].mxu0  ;;  %v2079_v23 = vadd.f32 %v1841_v7, %v4165_v26 }
 0xcba   : > { %v3159_v9 = vld [vmem:[%s4549_s3 + $0x38] sm:$0xff] }
 0xcbb   : > { %v2083_v27 = vsel %vm502_vm2, %v2079_v23, -inf }
 0xcbc   : > { %v1997_v13 = vpop.f32.mrb[18].mxu0 }
 0xcbd   : > { %v3413_v14 = vpop.f32.mrb[19].mxu0  ;;  %v2081_v25 = vadd.f32 %v1997_v13, %v4165_v26 }
 0xcbf   : > { %v2089_v30 = vsel %vm502_vm2, %v2081_v25, -inf }
 0xcc0   : > { %v2075_v15 = vpop.f32.mrb[18].mxu1 }
 0xcc1   : > { %v3418_v16 = vpop.f32.mrb[19].mxu1  ;;  %v2082_v29 = vadd.f32 %v2075_v15, %v4165_v26 }
 0xcc3   : > { %v2092_v31 = vsel %vm502_vm2, %v2082_v29, -inf }
 0xccb   : > { %2203 = vrot.lane.b32.xlu0 %v4328_v57, %s4588_s27 }
 0xd42   : > { %v2088_v17 = vpop.xlane.xlu0 %2087 }
 0xd43   : > { %v2096_v18 = vsub.f32 %v2080_v4, %v2088_v17 }
 0xd45   : > { %v2101_v19 = vmul.f32 1.442695, %v2096_v18 }
 0xd46   : > { %v2204_v20 = vpop.permute.xlu0 %2203 }
 0xd47   : > { %3652 = vpow2.f32 %v2101_v19  ;;  %3425 = vmatpush3.msra.mxu1 %v2204_v20 }
 0xd48   : > { %3434 = vmatprep.subr.mxu1 %v3843_v1 }
 0xd51   : > { %v3653_v22 = vpop.eup %3652 }
 0xd52   : > { %v2110_v24 = vsel %vm502_vm2, %v3653_v22, 0.0 }
 0xd53   : > { %2111 = vadd.xlane.f32.xlu1 %v2110_v24  ;;  %v2728_v24 = vrot.slane %v4323_v54, %v1459_v37  ;;  %v3160_v37 = vld [vmem:[%s4550_s4 + $0x20] sm:$0xff] }
 0xd57   : > { %2084 = vmax.xlane.f32.xlu1 %v2083_v27 }
 0xd5b   : > { %2090 = vmax.xlane.f32.xlu1 %v2089_v30 }
 0xd5f   : > { %2093 = vmax.xlane.f32.xlu1 %v2092_v31 }
 0xde0   : > { %v2112_v32 = vpop.xlane.xlu1 %2111 }
 0xde1   : > { %3654 = vrcp.f32 %v2112_v32 }
 0xde4   : > { %v2085_v33 = vpop.xlane.xlu1 %2084 }
 0xde5   : > { %v2095_v34 = vsub.f32 %v2079_v23, %v2085_v33 }
 0xde7   : > { %v2099_v35 = vmul.f32 1.442695, %v2095_v34 }
 0xde8   : > { %v2091_v36 = vpop.xlane.xlu1 %2090 }
 0xde9   : > { %3656 = vpow2.f32 %v2099_v35  ;;  %v2097_v38 = vsub.f32 %v2081_v25, %v2091_v36 }
 0xdeb   : > { %v3655_v39 = vpop.eup %3654  ;;  %v2103_v40 = vmul.f32 1.442695, %v2097_v38 }
 0xdec   : > { %v2124_v12 = vmul.f32 %v3655_v39, %v3653_v22  ;;  %v2094_v41 = vpop.xlane.xlu1 %2093  ;;  %v3161_v39 = vld [vmem:[%s4550_s4 + $0x28] sm:$0xff] }
 0xded   : > { %3658 = vpow2.f32 %v2103_v40  ;;  %v2098_v26 = vsub.f32 %v2082_v29, %v2094_v41  ;;  %v3531_v40 = vpack.c.bf16 %v3161_v39, %v3160_v37 }
 0xdee   : > { %3427 = vmatmul.mubr.msk.f32.vlgmr.msra.gmra.mrb[20].mxu1 %vm502_vm2, %v2124_v12  ;;  %v3163_v12 = vld [vmem:[%s4550_s4 + $0x38] sm:$0xff] }
 0xdef   : > { %v2105_v42 = vmul.f32 1.442695, %v2098_v26  ;;  %3436 = vmatprep.mubr.msk.f32.mxu1 %vm3842_vm0, %v3843_v1  ;;  %3435 = vmatpush3.msra.mxu1 %v3156_v2  ;;  %v3164_v26 = vld [vmem:[%s4551_s5 + $0x40] sm:$0xff] }
 0xdf0   : > { %3444 = vmatprep.subr.mxu1 %v3843_v1 }
 0xdf1   : > { %3660 = vpow2.f32 %v2105_v42  ;;  %v3165_v42 = vld [vmem:[%s4551_s5 + $0x48] sm:$0xff] }
 0xdf3   : > { %v3657_v43 = vpop.eup %3656 }
 0xdf4   : > { %v2107_v44 = vsel %vm502_vm2, %v3657_v43, 0.0 }
 0xdf5   : > { %2108 = vadd.xlane.f32.xlu1 %v2107_v44  ;;  %v3537_v44 = vpack.c.bf16 %v3165_v42, %v3164_v26 }
 0xdf7   : > { %v3659_v45 = vpop.eup %3658 }
 0xdf8   : > { %v2113_v46 = vsel %vm502_vm2, %v3659_v45, 0.0 }
 0xdf9   : > { %2114 = vadd.xlane.f32.xlu1 %v2113_v46 }
 0xdfb   : > { %v3661_v47 = vpop.eup %3660 }
 0xdfc   : > { %v2116_v48 = vsel %vm502_vm2, %v3661_v47, 0.0 }
 0xdfd   : > { %2117 = vadd.xlane.f32.xlu0 %v2116_v48  ;;  %v3169_v48 = vld [vmem:[%s4551_s5 + $0x68] sm:$0xff] }
 0xe0a   : > { %2127 = vrot.lane.b32.xlu1 %v4328_v57, %s3852_s25 }
 0xe0e   : > { %2425 = vrot.lane.b32.xlu1 %v4328_v57, %s4589_s20 }
 0xe12   : > { %2575 = vrot.lane.b32.xlu1 %v4328_v57, %s4590_s22 }
 0xe82   : > { %v2109_v49 = vpop.xlane.xlu1 %2108 }
 0xe83   : > { %3662 = vrcp.f32 %v2109_v49 }
 0xe86   : > { %v2115_v50 = vpop.xlane.xlu1 %2114 }
 0xe87   : > { %3664 = vrcp.f32 %v2115_v50 }
 0xe8a   : > { %v2128_v51 = vpop.permute.xlu1 %2127  ;;  %v2118_v56 = vpop.xlane.xlu0 %2117 }
 0xe8b   : > { %3420 = vmatpush3.msra.mxu0 %v2128_v51  ;;  %3666 = vrcp.f32 %v2118_v56 }
 0xe8c   : > { %3429 = vmatprep.subr.mxu0 %v3843_v1 }
 0xe8d   : > { %v3663_v52 = vpop.eup %3662 }
 0xe8e   : > { %v2123_v53 = vmul.f32 %v3663_v52, %v3657_v43  ;;  %v2426_v57 = vpop.permute.xlu1 %2425  ;;  %v3166_v43 = vld [vmem:[%s4551_s5 + $0x50] sm:$0xff] }
 0xe90   : > { %3422 = vmatmul.mubr.msk.f32.vlgmr.msra.gmra.mrb[20].mxu0 %vm502_vm2, %v2123_v53 }
 0xe91   : > { %3430 = vmatpush3.msra.mxu0 %v3157_v55  ;;  %3431 = vmatprep.mubr.msk.f32.mxu0 %vm3842_vm0, %v3843_v1  ;;  %v3665_v58 = vpop.eup %3664 }
 0xe92   : > { %3439 = vmatprep.subr.mxu0 %v3843_v1  ;;  %v2125_v60 = vmul.f32 %v3665_v58, %v3659_v45  ;;  %v2576_v62 = vpop.permute.xlu1 %2575  ;;  %v3167_v45 = vld [vmem:[%s4551_s5 + $0x58] sm:$0xff] }
 0xe93   : > { %v3540_v46 = vpack.c.bf16 %v3167_v45, %v3166_v43 }
 0xe95   : > { %v3667_v61 = vpop.eup %3666 }
 0xe96   : > { %v2126_v63 = vmul.f32 %v3667_v61, %v3661_v47  ;;  %v3168_v47 = vld [vmem:[%s4551_s5 + $0x60] sm:$0xff] }
 0xe97   : > { %v3543_v49 = vpack.c.bf16 %v3169_v48, %v3168_v47 }
 0xec1   : > { %v2275_v11 = vpop.f32.mrb[20].mxu1 }
 0xec2   : > { %v3428_v59 = vpop.f32.mrb[21].mxu1  ;;  %3432 = vmatmul.mubr.msk.f32.vlgmr.msra.gmra.mrb[22].mxu0 %vm502_vm2, %v2275_v11 }
 0xec3   : > { %3440 = vmatpush3.msra.mxu0 %v2426_v57  ;;  %3441 = vmatprep.mubr.msk.f32.mxu0 %vm3842_vm0, %v3843_v1  ;;  %v3170_v59 = vld [vmem:[%s4551_s5 + $0x70] sm:$0xff] }
 0xec4   : > { %3449 = vmatprep.subr.mxu0 %v3843_v1 }
 0xec6   : > { %3442 = vmatmul.mubr.msk.f32.vlgmr.msra.gmra.mrb[24].mxu0 %vm502_vm2, %v2125_v60  ;;  %v3171_v60 = vld [vmem:[%s4551_s5 + $0x78] sm:$0xff] }
 0xec7   : > { %3450 = vmatpush3.msra.mxu0 %v2576_v62  ;;  %3451 = vmatprep.mubr.msk.f32.mxu0 %vm3842_vm0, %v3843_v1  ;;  %v3546_v61 = vpack.c.bf16 %v3171_v60, %v3170_v59  ;;  %v2834_v62 = vrot.slane %v4323_v54, %v1566_v28 }
 0xec8   : > { %3530 = vmatprep.subr.bf16.mxu0 %v3841_v0 }
 0xeca   : > { %3452 = vmatmul.mubr.msk.f32.vlgmr.msra.gmra.mrb[26].mxu0 %vm502_vm2, %v2126_v63 }
 0xecb   : > { %3467 = vmatprep.mubr.msk.f32.mxu0 %vm3842_vm0, %v3843_v1  ;;  %3532 = vmatpush3.bf16.msra.mxu0 %v3531_v40 }
 0xecc   : > { %3533 = vmatprep.subr.bf16.mxu0 %v3841_v0 }
 0xf63   : > { %v2199_v4 = vpop.f32.mrb[20].mxu0 }
 0xf64   : > { %v3423_v5 = vpop.f32.mrb[21].mxu0  ;;  %3437 = vmatmul.mubr.msk.f32.vlgmr.msra.gmra.mrb[22].mxu1 %vm502_vm2, %v2199_v4 }
 0xf65   : > { %3445 = vmatpush3.msra.mxu1 %v3158_v3  ;;  %3446 = vmatprep.mubr.msk.f32.mxu1 %vm3842_vm0, %v3843_v1 }
 0xf66   : > { %3454 = vmatprep.subr.mxu1 %v3843_v1 }
 0xf95   : > { %v2348_v6 = vpop.f32.mrb[22].mxu0 }
 0xf96   : > { %v3433_v7 = vpop.f32.mrb[23].mxu0 }
 0xf99   : > { %v2497_v13 = vpop.f32.mrb[24].mxu0 }
 0xf9a   : > { %v3443_v14 = vpop.f32.mrb[25].mxu0  ;;  %3447 = vmatmul.mubr.msk.f32.vlgmr.msra.gmra.mrb[24].mxu1 %vm502_vm2, %v2497_v13 }
 0xf9b   : > { %3455 = vmatpush3.msra.mxu1 %v3159_v9  ;;  %3456 = vmatprep.mubr.msk.f32.mxu1 %vm3842_vm0, %v3843_v1 }
 0xf9c   : > { %3536 = vmatprep.subr.bf16.mxu1 %v3841_v0 }
 0xf9d   : > { %v2647_v15 = vpop.f32.mrb[26].mxu0 }
 0xf9e   : > { %v3453_v16 = vpop.f32.mrb[27].mxu0  ;;  %3457 = vmatmul.mubr.msk.f32.vlgmr.msra.gmra.mrb[26].mxu1 %vm502_vm2, %v2647_v15 }
 0xf9f   : > { %3486 = vmatprep.mubr.msk.f32.mxu1 %vm3842_vm0, %v3843_v1  ;;  %3538 = vmatpush3.bf16.msra.mxu1 %v3537_v44 }
 0xfa0   : > { %3539 = vmatprep.subr.bf16.mxu1 %v3841_v0 }
 0xfa3   : > { %3541 = vmatpush3.bf16.msra.mxu1 %v3540_v46 }
 0xfa4   : > { %3542 = vmatprep.subr.bf16.mxu1 %v3841_v0 }
 0xfa7   : > { %3544 = vmatpush3.bf16.msra.mxu1 %v3543_v49 }
 0xfa8   : > { %3545 = vmatprep.subr.bf16.mxu1 %v3841_v0 }
 0xfab   : > { %3547 = vmatpush3.bf16.msra.mxu1 %v3546_v61 }
0x1037   : > { %v2421_v17 = vpop.f32.mrb[22].mxu1 }
0x1038   : > { %v2422_v18 = vadd.f32 %v2421_v17, %v2348_v6  ;;  %v3438_v19 = vpop.f32.mrb[23].mxu1  ;;  %v2933_v17 = vld [vmem:[#allocation7 + $0x10] sm:$0xff] }
0x1039   : > { %v2934_v19 = vld [vmem:[#allocation7 + $0x18] sm:$0xff] }
0x106d   : > { %v2570_v20 = vpop.f32.mrb[24].mxu1 }
0x106e   : > { %v2574_v22 = vadd.f32 %v2570_v20, %v2422_v18  ;;  %v3448_v23 = vpop.f32.mrb[25].mxu1  ;;  %v3552_v20 = vpack.c.bf16 %v2934_v19, %v2933_v17 }
0x1071   : > { %v2720_v25 = vpop.f32.mrb[26].mxu1 }
0x1072   : > { %v2724_v27 = vadd.f32 %v2720_v25, %v2574_v22  ;;  %v3458_v29 = vpop.f32.mrb[27].mxu1 }
0x1074   : > { %v2729_v30 = vadd.f32 %v2728_v24, %v2724_v27 }
0x1076   : > { %v2730_v31 = vadd.f32 %v2729_v30, %v4314_v8  ;;  %v3162_v8 = vld [vmem:[%s4550_s4 + $0x30] sm:$0xff] }
0x1077   : > { %v3534_v41 = vpack.c.bf16 %v3163_v12, %v3162_v8 }
0x1078   : > { %v2731_v32 = vsel %vm425_vm1, %v2730_v31, 0.0 }
0x1079   : > { %2732 = vadd.xlane.f32.xlu1 %v2731_v32  ;;  %3535 = vmatpush3.bf16.msra.mxu0 %v3534_v41 }
0x107a   : > { %3548 = vmatprep.subr.bf16.mxu0 %v3841_v0 }
0x108a   : > { %2923 = vrot.lane.b32.xlu1 %v2834_v62, %s3845_s28 }
0x1106   : > { %v2733_v33 = vpop.xlane.xlu1 %2732 }
0x1107   : > { %v2734_v34 = vmul.f32 0.03125, %v2733_v33  ;;  %v2935_v33 = vld [vmem:[%s4554_s8] sm:$0x1] }
0x1109   : > { %v2735_v35 = vsub.f32 %v2730_v31, %v2734_v34 }
0x110a   : > { %v2924_v22 = vpop.permute.xlu1 %2923 }
0x110b   : > { %v2736_v36 = vmul.f32 %v2735_v35, %v2735_v35 }
0x110d   : > { %v2737_v38 = vsel %vm425_vm1, %v2736_v36, 0.0 }
0x110e   : > { %2738 = vadd.xlane.f32.xlu0 %v2737_v38 }
0x1124   : > { %2745 = vrot.lane.b32.xlu0 %v2728_v24, %s3845_s28 }
0x1128   : > { %2749 = vrot.lane.b32.xlu0 %v2728_v24, %s3852_s25 }
0x119b   : > { %v2739_v50 = vpop.xlane.xlu0 %2738 }
0x119c   : > { %v2740_v51 = vmul.f32 0.03125, %v2739_v50 }
0x119e   : > { %v2741_v52 = vadd.f32 1e-05, %v2740_v51 }
0x119f   : > { %v2746_v53 = vpop.permute.xlu0 %2745 }
0x11a0   : > { %3668 = vrsqrt.f32 %v2741_v52 }
0x11a3   : > { %v2750_v57 = vpop.permute.xlu0 %2749 }
0x11aa   : > { %v3669_v55 = vpop.eup %3668 }
0x11ab   : > { %v2743_v56 = vmul.f32 %v3669_v55, %v2735_v35 }
0x11ad   : > { %v2748_v58 = vmul.f32 %v2746_v53, %v2743_v56 }
0x11af   : > { %v2752_v11 = vadd.f32 %v2750_v57, %v2748_v58 }
0x11b1   : > { %3468 = vmatmul.mubr.msk.f32.vlgmr.msra.gmra.mrb[28].mxu0 %vm425_vm1, %v2752_v11 }
0x11b2   : > { %3497 = vmatprep.mubr.msk.f32.mxu0 %vm3842_vm0, %v3843_v1  ;;  %v2756_v1 = vrot.slane %v4323_v54, %v1488_v21  ;;  %v2931_v21 = vld [vmem:[#allocation7] sm:$0xff]  ;;  %v2932_v54 = vld [vmem:[#allocation7 + $0x8] sm:$0xff] }
0x11b3   : > { %v3549_v18 = vpack.c.bf16 %v2932_v54, %v2931_v21 }
0x11b5   : > { %3550 = vmatpush3.bf16.msra.mxu0 %v3549_v18 }
0x11b6   : > { %3551 = vmatprep.subr.bf16.mxu0 %v3841_v0 }
0x11b9   : > { %3553 = vmatpush3.bf16.msra.mxu0 %v3552_v20 }
0x1284   : > { %v2826_v63 = vpop.f32.mrb[28].mxu0 }
0x1285   : > { %v2827_v2 = vadd.f32 %v2826_v63, %v2756_v1  ;;  %v3469_v3 = vpop.f32.mrb[29].mxu0 }
0x1287   : > { %v2830_v4 = vmax.f32 %v2827_v2, 0.0 }
0x1289   : > { %3487 = vmatmul.mubr.msk.f32.vlgmr.msra.gmra.mrb[28].mxu1 %vm1568_vm3, %v2830_v4 }
0x135c   : > { %v2904_v5 = vpop.f32.mrb[28].mxu1 }
0x135d   : > { %v2905_v6 = vadd.f32 %v2904_v5, %v2834_v62  ;;  %v3488_v7 = vpop.f32.mrb[29].mxu1 }
0x135f   : > { %v2908_v9 = vadd.f32 %v2905_v6, %v2752_v11 }
0x1361   : > { %v2909_v13 = vsel %vm425_vm1, %v2908_v9, 0.0 }
0x1362   : > { %2910 = vadd.xlane.f32.xlu0 %v2909_v13 }
0x13ef   : > { %v2911_v28 = vpop.xlane.xlu0 %2910 }
0x13f0   : > { %v2912_v14 = vmul.f32 0.03125, %v2911_v28 }
0x13f2   : > { %v2913_v15 = vsub.f32 %v2908_v9, %v2912_v14 }
0x13f4   : > { %v2914_v16 = vmul.f32 %v2913_v15, %v2913_v15 }
0x13f6   : > { %v2915_v10 = vsel %vm425_vm1, %v2914_v16, 0.0 }
0x13f7   : > { %2916 = vadd.xlane.f32.xlu1 %v2915_v10 }
0x1408   : > { %2927 = vrot.lane.b32.xlu1 %v2834_v62, %s3852_s25 }
0x1484   : > { %v2917_v23 = vpop.xlane.xlu1 %2916 }
0x1485   : > { %v2918_v24 = vmul.f32 0.03125, %v2917_v23 }
0x1487   : > { %v2919_v25 = vadd.f32 1e-05, %v2918_v24 }
0x1488   : > { %v2928_v30 = vpop.permute.xlu1 %2927 }
0x1489   : > { %3670 = vrsqrt.f32 %v2919_v25 }
0x1493   : > { %v3671_v27 = vpop.eup %3670 }
0x1494   : > { %v2921_v29 = vmul.f32 %v3671_v27, %v2913_v15 }
0x1496   : > { %v2926_v31 = vmul.f32 %v2924_v22, %v2921_v29 }
0x1498   : > { %v2930_v32 = vadd.f32 %v2928_v30, %v2926_v31 }
0x149a   : > { %3498 = vmatmul.mubr.msk.f32.vlgmr.msra.gmra.mrb[30].mxu0 %vm425_vm1, %v2930_v32 }
0x156d   : > { %v3005_v0 = vpop.f32.mrb[30].mxu0 }
0x156e   : > { %v3006_v34 = vadd.f32 %v3005_v0, %v2935_v33  ;;  %v3499_v35 = vpop.f32.mrb[31].mxu0 }
0x1570   : > { %3009 = vst [vmem:[%s397_s14] sm:$0x1] %v3006_v34 }
0x1571   : > { %3773 = shalt.err (!%p3770_p1)
}
0x1572   : > { %s3774_s11 = scalar_lea.hbm %s4502_s24, 16  ;;  %s3778_s22 = scalar_lea.hbm %s4555_s9, 32 }
0x1573   : > { %p3775_p6 = scmp.ne.s32.totalorder %s4502_s24, %s3774_s11  ;;  %p3779_p0 = scmp.lt.u32.totalorder %s4502_s24, %s4555_s9 }
0x1574   : > { %p3780_p12 = scmp.lt.u32.totalorder %s3778_s22, %s3774_s11  ;;  %p3782_p10 = scmp.lt.u32.totalorder %s3774_s11, %s4502_s24 }
0x1575   : > { %p3776_p8 = pnand %p3775_p6, %p4591_p13 }
0x1576   : > { %p3781_p11 = por %p3780_p12, %p3779_p0 }
0x1577   : > { %p3777_p4 = pneg %p3776_p8 }
0x1578   : > { %p3783_p3 = por %p3782_p10, %p3781_p11 }
0x157a   : > { %p3784_p7 = pnand %p3783_p3, %p3777_p4 }
0x157c   : > { %3787 = shalt.err (!%p3784_p7)
}
0x157d   : > { %3562 = dma.vmem_to_hbm [thread:$0]  (%p4591_p13), %s4504_s18, 16, %s4502_s24, %s3011_s17  }
0x157e PF: > { %s4592_s28 = sld [smem:[#allocation13_spill]]  ;;  %s4593_s25 = sld [smem:[#allocation15_spill]] }
0x157f   : > { %p4595_p2 = scmp.ge.s32.totalorder %s3834_s12, 2 }
0x1584   : > { %s3035_s26 = sand.u32 1, %s4592_s28   ;;  %p4594_p9 = scmp.ne.s32.totalorder %s4593_s25, 0 }
0x1585   : > { %s3036_s14 = scalar_lea.sflag [#allocation4], %s3035_s26 }
0x1586   : > { %p3576_p5 = pnand %p4595_p2, %p4594_p9 }
0x1588   : > { %3817 = dma.done.wait (!%p3576_p5), %s3036_s14, 16  }
0x1589   : > { %3819 = vsyncadd (!%p3576_p5), %s3036_s14, 4294967280  ;;  %s4596_s12 = sld [smem:[#allocation16_spill]]  ;;  %s4597_s21 = sld [smem:[#allocation14_spill]] }
0x158a   : > { %s4598_s11 = sld [smem:[#allocation17_spill]]  ;;  %s4599_s30 = smov %s3826_s10 }
0x158f   : > { %p25_p1 = scmp.ge.s32.totalorder %s4596_s12, 4   ;;  %s4600_s10 = smov %s4597_s21 }
0x1591   :  { %27 = sbr.rel (!%p25_p1) target bundleno = 9 (0x9), region = 123 }
0x1598   :  { %3040 = vsyncpa [#allocation3], 1 }
0x1599   :  { %3042 = vsyncpa [#allocation3 + $0x1], 1 }
0x159a   :  { %3043 = vsyncpa [#allocation6], 1 }
0x159b   :  { %3045 = vsyncpa [#allocation6 + $0x1], 1 }
0x159c   :  { %3046 = vsyncpa [#allocation4], 1 }
0x159d   :  { %3048 = vsyncpa [#allocation4 + $0x1], 1 }

</bundles_post_ra>
